<compile_context>
chip_gen: v5e
topology: v5e:2x2
jax: 0.10.0
libtpu: 0.0.40
codegen_flags: <defaults>
</compile_context>

<pallas_src>
import jax
import jax.numpy as jnp
from jax.experimental import pallas as pl
from jax.experimental.pallas import tpu as pltpu


def _round_up(x, m):
    return (x + m - 1) // m * m


# ---------------------------------------------------------------------------
# Kernels
# ---------------------------------------------------------------------------

def _pool_kernel(x_ref, feat_ref):
    """Global average pool over the flattened spatial (last) axis.

    x_ref   : (TB, Cf, HW)  NCHW feature-map view tile, HW on the lane axis
    feat_ref: (TB, Cf)      pooled feature (== `feature` in forward())
    """
    x = x_ref[...].astype(jnp.float32)
    inv_hw = 1.0 / x_ref.shape[2]                    # static block dim
    feat_ref[...] = (jnp.sum(x, axis=-1) * inv_hw).astype(feat_ref.dtype)


def _pool_proj_contrast_kernel(x_ref, wp_ref, bp_ref, wc_ref, bc_ref,
                               feat_ref, z_ref, p_ref):
    """Fused global-average-pool + projection_head + contrast_head (train path).

    x_ref   : (TB, Cf, HW)  feature-map batch tile (NCHW view, no transpose)
    wp_ref  : (Cf, Hd)      projection_head weight (pre-transposed, resident)
    bp_ref  : (1, Hd)       projection_head bias
    wc_ref  : (Hd, Hd)      contrast_head weight (pre-transposed, resident)
    bc_ref  : (1, Hd)       contrast_head bias
    feat_ref: (TB, Cf)      pooled feature
    z_ref   : (TB, Hd)      projection_head output
    p_ref   : (TB, Hd)      contrast_head output
    """
    x = x_ref[...].astype(jnp.float32)
    inv_hw = 1.0 / x_ref.shape[2]
    feat = jnp.sum(x, axis=-1) * inv_hw              # (TB, Cf) f32
    feat_ref[...] = feat.astype(feat_ref.dtype)
    # Both matmuls run off the in-VMEM `feat` / `z` with f32 MXU accumulation;
    # biases folded straight into the accumulator.
    z = jnp.dot(feat, wp_ref[...].astype(jnp.float32),
                preferred_element_type=jnp.float32) + bp_ref[...].astype(jnp.float32)
    z_ref[...] = z.astype(z_ref.dtype)
    p = jnp.dot(z, wc_ref[...].astype(jnp.float32),
                preferred_element_type=jnp.float32) + bc_ref[...].astype(jnp.float32)
    p_ref[...] = p.astype(p_ref.dtype)


# ---------------------------------------------------------------------------
# Batch tiling helper
# ---------------------------------------------------------------------------

def _batch_tiling(B, tb, row_bytes):
    """Sublane-aligned batch tile.

    * >= 2 grid steps whenever B > 8 so v7x's two TensorCores both get a tile
      under the "parallel" batch axis.
    * per-buffer x block capped at ~4 MiB so the double-buffer (8 MiB) fits the
      smallest default scoped-VMEM budget (v5e: 16 MiB) with room to spare on
      v6e/v7x; no vmem_limit_bytes override needed.
    """
    B8 = _round_up(max(B, 1), 8)
    TB = min(_round_up(tb, 8), B8)
    if B8 > 8:
        TB = min(TB, _round_up(pl.cdiv(B8, 2), 8))
    vmem_rows = max(8, ((4 * 1024 * 1024) // max(row_bytes, 1)) // 8 * 8)
    TB = max(8, min(TB, vmem_rows))
    Bpad = _round_up(B, TB)
    return TB, Bpad


# ---------------------------------------------------------------------------
# Wrappers
# ---------------------------------------------------------------------------

def avgpool_forward(feat_map_nchw, *, tb=64):
    """F.avg_pool2d(out, out.size(3)) + view(B, -1), i.e. the inference path."""
    B, Cf, H, W = feat_map_nchw.shape
    HW = H * W
    x = feat_map_nchw.reshape(B, Cf, HW)             # free view of NCHW: no transpose
    row_bytes = Cf * HW * x.dtype.itemsize
    TB, Bpad = _batch_tiling(B, tb, row_bytes)
    if Bpad != B:                                    # only pads when B % TB != 0
        x = jnp.pad(x, ((0, Bpad - B), (0, 0), (0, 0)))

    feat = pl.pallas_call(
        _pool_kernel,
        out_shape=jax.ShapeDtypeStruct((Bpad, Cf), x.dtype),
        grid_spec=pltpu.PrefetchScalarGridSpec(
            num_scalar_prefetch=0,
            grid=(Bpad // TB,),
            in_specs=[pl.BlockSpec((TB, Cf, HW), lambda i: (i, 0, 0))],
            out_specs=pl.BlockSpec((TB, Cf), lambda i: (i, 0)),
        ),
        compiler_params=pltpu.CompilerParams(
            dimension_semantics=("parallel",),       # shard batch tiles over TCs
        ),
    )(x)
    return feat[:B]


def head_train_forward(feat_map_nchw, params, *, tb=64):
    """Fused pool + projection_head + contrast_head (one pallas_call)."""
    B, Cf, H, W = feat_map_nchw.shape
    HW = H * W
    wp, bp = params["proj_w_t"], params["proj_b"]
    wc, bc = params["ctr_w_t"], params["ctr_b"]
    Hd = wp.shape[1]
    assert wp.shape == (Cf, Hd) and wc.shape == (Hd, Hd)
    assert Hd % 128 == 0 and Cf % 8 == 0             # lane-dense outputs

    x = feat_map_nchw.reshape(B, Cf, HW)             # free view, no transpose
    row_bytes = Cf * HW * x.dtype.itemsize
    TB, Bpad = _batch_tiling(B, tb, row_bytes)
    if Bpad != B:
        x = jnp.pad(x, ((0, Bpad - B), (0, 0), (0, 0)))

    feat, z, p = pl.pallas_call(
        _pool_proj_contrast_kernel,
        out_shape=(jax.ShapeDtypeStruct((Bpad, Cf), x.dtype),
                   jax.ShapeDtypeStruct((Bpad, Hd), x.dtype),
                   jax.ShapeDtypeStruct((Bpad, Hd), x.dtype)),
        grid_spec=pltpu.PrefetchScalarGridSpec(
            num_scalar_prefetch=0,
            grid=(Bpad // TB,),
            in_specs=[
                pl.BlockSpec((TB, Cf, HW), lambda i: (i, 0, 0)),
                pl.BlockSpec((Cf, Hd), lambda i: (0, 0)),    # resident weight
                pl.BlockSpec((1, Hd), lambda i: (0, 0)),     # resident bias
                pl.BlockSpec((Hd, Hd), lambda i: (0, 0)),    # resident weight
                pl.BlockSpec((1, Hd), lambda i: (0, 0)),     # resident bias
            ],
            out_specs=(pl.BlockSpec((TB, Cf), lambda i: (i, 0)),
                       pl.BlockSpec((TB, Hd), lambda i: (i, 0)),
                       pl.BlockSpec((TB, Hd), lambda i: (i, 0))),
        ),
        compiler_params=pltpu.CompilerParams(
            dimension_semantics=("parallel",),
        ),
    )(x, wp, bp.reshape(1, Hd), wc, bc.reshape(1, Hd))
    return feat[:B], z[:B], p[:B]


def resnet_modify10_head(feat_map_nchw, params, train=False, *, tb=64):
    """Tail of ResNet_modify10.forward.

    Note: fc / fc_cb are parameters of the module but are never used in
    forward(), so no logits are computed (per performance review: drop the
    wasted fc matmul + writeback).
    """
    if train:
        feature, z, p = head_train_forward(feat_map_nchw, params, tb=tb)
        return feature, feature, z, p
    return avgpool_forward(feat_map_nchw, tb=tb)


# ---------------------------------------------------------------------------
# Parameter init (matches PyTorch _weights_init: kaiming_normal_ on Linear weights)
# ---------------------------------------------------------------------------

def _kaiming_normal(key, out_f, in_f, dtype=jnp.float32):
    # PyTorch init.kaiming_normal_ default: fan_in mode, a=0 -> std = sqrt(2/fan_in)
    std = (2.0 / in_f) ** 0.5
    return jax.random.normal(key, (out_f, in_f), dtype=dtype) * std


def _linear_bias(key, in_f, out_f, dtype=jnp.float32):
    # nn.Linear default bias: U(-1/sqrt(fan_in), 1/sqrt(fan_in))
    bound = 1.0 / (in_f ** 0.5)
    return jax.random.uniform(key, (out_f,), dtype=dtype, minval=-bound, maxval=bound)


def init_head_params(key, out_dim, hidden_dim, dtype=jnp.float32):
    ks = jax.random.split(key, 4)
    # projection_head: Linear(out_dim -> hidden_dim); contrast_head: Linear(hidden -> hidden)
    w_p = _kaiming_normal(ks[0], hidden_dim, out_dim, dtype)    # (128, 256)
    b_p = _linear_bias(ks[1], out_dim, hidden_dim, dtype)
    w_c = _kaiming_normal(ks[2], hidden_dim, hidden_dim, dtype) # (128, 128)
    b_c = _linear_bias(ks[3], hidden_dim, hidden_dim, dtype)
    # Stored pre-transposed (lane-dense N) once at init.
    return {
        "proj_w_t": w_p.T, "proj_b": b_p,
        "ctr_w_t": w_c.T, "ctr_b": b_c,
    }


if __name__ == "__main__":
    key = jax.random.PRNGKey(0)
    nf = 64
    out_dim = 4 * nf            # 256 (block.expansion == 1 for the CIFAR basic block)
    hidden_dim = 128            # hardcoded in the module
    B, H, W = 16, 8, 8          # layer3 output spatial for a 32x32 CIFAR input

    kx, kp = jax.random.split(key)
    params = init_head_params(kp, out_dim, hidden_dim)

    # Stand-in for the layer3 output feature map (conv backbone not translated).
    feat_map = jax.random.normal(kx, (B, out_dim, H, W), dtype=jnp.float32)

    # B=16 -> 2 batch tiles of 8 rows: exercises pipelining + "parallel" sharding.
    feature = resnet_modify10_head(feat_map, params, train=False)
    out, out_cb, z, p = resnet_modify10_head(feat_map, params, train=True)
    jax.block_until_ready((feature, out, out_cb, z, p))

    # Pure-JAX references
    feat_ref = jnp.mean(feat_map, axis=(2, 3))                                 # (B, 256)
    z_ref = feat_ref @ params["proj_w_t"] + params["proj_b"]
    p_ref = z_ref @ params["ctr_w_t"] + params["ctr_b"]

    assert feature.shape == (B, out_dim)
    assert out.shape == (B, out_dim) and out_cb.shape == (B, out_dim)
    assert z.shape == (B, hidden_dim) and p.shape == (B, hidden_dim)
    assert jnp.allclose(feature, feat_ref, atol=1e-4, rtol=1e-4)
    assert jnp.allclose(out, feat_ref, atol=1e-4, rtol=1e-4)
    assert jnp.allclose(out_cb, feat_ref, atol=1e-4, rtol=1e-4)
    assert jnp.allclose(z, z_ref, atol=1e-4, rtol=1e-4)
    assert jnp.allclose(p, p_ref, atol=1e-4, rtol=1e-4)

    print("KERNEL_OK")
</pallas_src>

<mosaic_0001>
module attributes {stable_mosaic.version = 11 : i64} {
  func.func @_pool_kernel(%arg0: i32, %arg1: memref<8x256x64xf32, #tpu.memory_space<vmem>>, %arg2: memref<8x256xf32, #tpu.memory_space<vmem>>) attributes {dimension_semantics = [#tpu.dimension_semantics<parallel>], iteration_bounds = array<i64: 2>, scalar_prefetch = 0 : i64, scratch_operands = 0 : i64, tpu.core_type = #tpu.core_type<tc>, window_params = [{transform_indices = @transform_0, window_bounds = array<i64: 8, 256, 64>}, {transform_indices = @transform_1, window_bounds = array<i64: 8, 256>}]} {
    %c0 = arith.constant 0 : index
    %c0_0 = arith.constant 0 : index
    %c0_1 = arith.constant 0 : index
    %0 = vector.load %arg1[%c0, %c0_0, %c0_1] : memref<8x256x64xf32, #tpu.memory_space<vmem>>, vector<8x256x64xf32>
    %cst = arith.constant dense<0.000000e+00> : vector<8x256xf32>
    %1 = vector.multi_reduction <add>, %0, %cst [2] : vector<8x256x64xf32> to vector<8x256xf32>
    %cst_2 = arith.constant 1.562500e-02 : f32
    %2 = vector.broadcast %cst_2 : f32 to vector<8x256xf32>
    %3 = arith.mulf %1, %2 : vector<8x256xf32>
    %c0_3 = arith.constant 0 : index
    %c0_4 = arith.constant 0 : index
    %4 = vector.load %arg2[%c0_3, %c0_4] : memref<8x256xf32, #tpu.memory_space<vmem>>, vector<8x256xf32>
    tpu.vector_store %arg2[%c0_3, %c0_4], %3 {strides = array<i32>} : memref<8x256xf32, #tpu.memory_space<vmem>>, vector<8x256xf32>,
    return
  }
  func.func @transform_0(%arg0: i32) -> (i32, i32, i32) {
    %c0_i32 = arith.constant 0 : i32
    %c0_i32_0 = arith.constant 0 : i32
    %c0_i32_1 = arith.constant 0 : i32
    return %arg0, %c0_i32, %c0_i32_0 : i32, i32, i32
  }
  func.func @transform_1(%arg0: i32) -> (i32, i32) {
    %c0_i32 = arith.constant 0 : i32
    %c0_i32_0 = arith.constant 0 : i32
    return %arg0, %c0_i32 : i32, i32
  }
}

</mosaic_0001>

<bundles_post_ra>
// kernel: tpu_custom_call.1
= control target key start
LH: loop header
LB: loop body
LE: loop exit
PB: predicated region body
PF: predicated region fallthrough
CT: control target
= control target key end

     0   :  { %6 = vsyncpa [#allocation3], 0  ;;  %s3963_s0 = inlined_call_operand.vmem [shape: f32[16,256,64], index: 0, kind: input, shape index: {}]   ;;  %s3964_s1 = inlined_call_operand.hbm [shape: f32[16,256], index: 1, kind: output, shape index: {}]  }
   0x1   :  { %8 = vsyncpa [#allocation3 + $0x1], 0  ;;  %s2414_s6 = smov 0   ;;  %s2416_s7 = smov 0  }
   0x2   :  { %s2418_s8 = smov 0   ;;  %s2420_s9 = smov 0  }
   0x3 LB: > { %s2435_s10 = sadd.s32 4294967295, %s2402_s9   ;;  %s2286_s11 = sadd.s32 4294967294, %s2402_s9   ;;  %s2402_s9 = sphi %s2420_s9, %s4158_s9   ;;  %s2398_s8 = sphi %s2418_s8, %s4157_s8   ;;  %s2394_s7 = sphi %s2416_s7, %s4156_s7   ;;  %s2390_s6 = sphi %s2414_s6, %s4155_s6  }
   0x4   : > { %s2439_s12 = sadd.s32 1, %s2402_s9   ;;  %s47_s13 = sadd.s32 1, %s2398_s8 }
   0x5   : > { %s44_s14 = ssub.s32 %s2402_s9, %s2439_s12  ;;  %p57_p0 = scmp.ne.s32.totalorder %s2398_s8, %s2394_s7 }
   0x6   : > { %p45_p1 = scmp.eq.s32.totalorder %s44_s14, 0  ;;  %p58_p2 = scmp.eq.s32.totalorder %s2435_s10, 1 }
   0x7   : > { %p63_p3 = scmp.ne.s32.totalorder %s2394_s7, %s2390_s6  ;;  %p64_p4 = scmp.eq.s32.totalorder %s2286_s11, 1 }
   0x8   : > { %s2450_s15 = scalar_select %p45_p1, %s2398_s8, %s47_s13  }
   0x9   : > { %p2452_p5 = por %p58_p2, %p57_p0  ;;  %p2456_p6 = por %p64_p4, %p63_p3 }
   0xa   : > { %p2289_p7 = scmp.ge.s32.totalorder %s2402_s9, 1  ;;  %p92_p8 = scmp.lt.s32.totalorder %s2402_s9, 3 }
   0xc   : > { %p93_p9 = pnand %p2289_p7, %p92_p8 }
   0xe   : > { %96 = sbr.rel (%p93_p9) target bundleno = 833 (0x341), region = 24 }
  0x13   : > { %s2291_s18 = sshll.u32 %s2435_s10, 3  ;;  %vm376_vm0 = vcmask 523264   ;;  %vm1662_vm1 = vcmask 130112   ;;  %vm3969_vm2 = vcmask 195712   ;;  %vm1670_vm3 = vcmask 261312   ;;  %s110_s23 = sand.u32 1, %s2394_s7  }
  0x14   : > { %p114_p10 = scmp.lt.s32.totalorder %s2291_s18, 15  ;;  %vm3971_vm4 = vcmask 326912   ;;  %vm3970_vm5 = vcmask 392512   ;;  %vm1682_vm6 = vcmask 458112   ;;  %vm1686_vm7 = vcmask 523712   ;;  %s2290_s24 = sshll.u32 %s110_s23, 4 }
  0x15   : > { %vm3972_vm8 = vcmask 589312   ;;  %vm3965_vm9 = vcmask 654912   ;;  %vm3968_vm10 = vcmask 720512   ;;  %vm3966_vm11 = vcmask 786112   ;;  %s2300_s25 = sshll.u32 %s2435_s10, 4  ;;  %s112_s29 = scalar_lea.vmem [#allocation2], %s2290_s24 }
  0x16   : > { %s4160_s18 = smov (!%p114_p10, %s2291_s18), 15  ;;  %vm3967_vm12 = vcmask 851712   ;;  %vm1710_vm13 = vcmask 917312   ;;  %vm1714_vm14 = vcmask 982912   ;;  %vm1718_vm15 = vcmask 1048512   ;;  %s2222_s28 = scalar_lea.hbm %s3964_s1, %s2300_s25 }
  0x17   : > { %s2299_s19 = sshll.u32 %s4160_s18, 8  ;;  %s2224_s30 = sshll.u32 %s112_s29, 4  ;;  %s2225_s30 = int_to_ptr.vmem [resolvable:$true] %s2224_s30 }
  0x18   : > { %s2466_s22 = scalar_lea.vmem %s3963_s0, %s2299_s19  ;;  %s2226_s2 = sshll.u32 %s2222_s28, 4  ;;  %s2227_s2 = int_to_ptr.hbm [resolvable:$true] %s2226_s2 }
  0x19   : > { %v124_v0 = vld [vmem:[%s2466_s22 + $0x20] sm:$0xff]  ;;  %v122_v1 = vld [vmem:[%s2466_s22 + $0x10] sm:$0xff]  ;;  %v125_v6 = vld [vmem:[%s2466_s22 + $0x28] sm:$0xff]  ;;  %s2211_s3 = scalar_lea.sflag [#allocation3], %s110_s23  ;;  %s2354_s4 = sshra.s32 %s2227_s2, 4  ;;  %s2355_s4 = int_to_ptr.hbm [resolvable:$true] %s2354_s4 }
  0x1a   : > { %v120_v2 = vld [vmem:[%s2466_s22] sm:$0xff]  ;;  %v389_v3 = vsel %vm376_vm0, %v124_v0, 0.0  ;;  %v383_v4 = vsel %vm376_vm0, %v122_v1, 0.0  ;;  %v123_v7 = vld [vmem:[%s2466_s22 + $0x18] sm:$0xff]  ;;  %v121_v8 = vld [vmem:[%s2466_s22 + $0x8] sm:$0xff]  ;;  %v392_v9 = vsel %vm376_vm0, %v125_v6, 0.0  ;;  %p2361_p0 = scmp.lt.s32.totalorder %s2355_s4, %s3964_s1 }
  0x1b   : > { %v377_v5 = vsel %vm376_vm0, %v120_v2, 0.0  ;;  %390 = vadd.xlane.f32.xlu2 %v389_v3  ;;  %384 = vadd.xlane.f32.xlu1 %v383_v4  ;;  %v386_v10 = vsel %vm376_vm0, %v123_v7, 0.0  ;;  %v380_v11 = vsel %vm376_vm0, %v121_v8, 0.0  ;;  %v128_v12 = vld [vmem:[%s2466_s22 + $0x40] sm:$0xff]  ;;  %v127_v13 = vld [vmem:[%s2466_s22 + $0x38] sm:$0xff]  ;;  %v126_v14 = vld [vmem:[%s2466_s22 + $0x30] sm:$0xff] }
  0x1c   : > { %378 = vadd.xlane.f32.xlu0 %v377_v5  ;;  %v401_v15 = vsel %vm376_vm0, %v128_v12, 0.0  ;;  %v398_v16 = vsel %vm376_vm0, %v127_v13, 0.0  ;;  %v395_v17 = vsel %vm376_vm0, %v126_v14, 0.0  ;;  %v131_v18 = vld [vmem:[%s2466_s22 + $0x58] sm:$0xff]  ;;  %v130_v19 = vld [vmem:[%s2466_s22 + $0x50] sm:$0xff]  ;;  %v129_v20 = vld [vmem:[%s2466_s22 + $0x48] sm:$0xff] }
  0x1d   : > { %v410_v21 = vsel %vm376_vm0, %v131_v18, 0.0  ;;  %v407_v22 = vsel %vm376_vm0, %v130_v19, 0.0  ;;  %v404_v23 = vsel %vm376_vm0, %v129_v20, 0.0  ;;  %v134_v24 = vld [vmem:[%s2466_s22 + $0x70] sm:$0xff]  ;;  %v133_v25 = vld [vmem:[%s2466_s22 + $0x68] sm:$0xff]  ;;  %v132_v26 = vld [vmem:[%s2466_s22 + $0x60] sm:$0xff] }
  0x1e   : > { %v419_v27 = vsel %vm376_vm0, %v134_v24, 0.0  ;;  %v416_v28 = vsel %vm376_vm0, %v133_v25, 0.0  ;;  %v413_v29 = vsel %vm376_vm0, %v132_v26, 0.0  ;;  %v137_v30 = vld [vmem:[%s2466_s22 + $0x88] sm:$0xff]  ;;  %v136_v31 = vld [vmem:[%s2466_s22 + $0x80] sm:$0xff]  ;;  %v135_v32 = vld [vmem:[%s2466_s22 + $0x78] sm:$0xff] }
  0x1f   : > { %v428_v33 = vsel %vm376_vm0, %v137_v30, 0.0  ;;  %v425_v34 = vsel %vm376_vm0, %v136_v31, 0.0  ;;  %v422_v35 = vsel %vm376_vm0, %v135_v32, 0.0  ;;  %v140_v36 = vld [vmem:[%s2466_s22 + $0xa0] sm:$0xff]  ;;  %v139_v37 = vld [vmem:[%s2466_s22 + $0x98] sm:$0xff]  ;;  %v138_v38 = vld [vmem:[%s2466_s22 + $0x90] sm:$0xff] }
  0x20   : > { %v437_v39 = vsel %vm376_vm0, %v140_v36, 0.0  ;;  %v434_v40 = vsel %vm376_vm0, %v139_v37, 0.0  ;;  %v431_v41 = vsel %vm376_vm0, %v138_v38, 0.0  ;;  %v143_v42 = vld [vmem:[%s2466_s22 + $0xb8] sm:$0xff]  ;;  %v142_v43 = vld [vmem:[%s2466_s22 + $0xb0] sm:$0xff]  ;;  %v141_v44 = vld [vmem:[%s2466_s22 + $0xa8] sm:$0xff] }
  0x21   : > { %v446_v45 = vsel %vm376_vm0, %v143_v42, 0.0  ;;  %v443_v46 = vsel %vm376_vm0, %v142_v43, 0.0  ;;  %v440_v47 = vsel %vm376_vm0, %v141_v44, 0.0  ;;  %v146_v48 = vld [vmem:[%s2466_s22 + $0xd0] sm:$0xff]  ;;  %v145_v49 = vld [vmem:[%s2466_s22 + $0xc8] sm:$0xff]  ;;  %v144_v50 = vld [vmem:[%s2466_s22 + $0xc0] sm:$0xff] }
  0x22   : > { %v455_v51 = vsel %vm376_vm0, %v146_v48, 0.0  ;;  %v452_v52 = vsel %vm376_vm0, %v145_v49, 0.0  ;;  %v449_v53 = vsel %vm376_vm0, %v144_v50, 0.0  ;;  %v149_v54 = vld [vmem:[%s2466_s22 + $0xe8] sm:$0xff]  ;;  %v148_v55 = vld [vmem:[%s2466_s22 + $0xe0] sm:$0xff]  ;;  %v147_v56 = vld [vmem:[%s2466_s22 + $0xd8] sm:$0xff] }
  0x23   : > { %393 = vadd.xlane.f32.xlu2 %v392_v9  ;;  %387 = vadd.xlane.f32.xlu1 %v386_v10  ;;  %v464_v57 = vsel %vm376_vm0, %v149_v54, 0.0  ;;  %v461_v58 = vsel %vm376_vm0, %v148_v55, 0.0  ;;  %v458_v59 = vsel %vm376_vm0, %v147_v56, 0.0  ;;  %v152_v60 = vld [vmem:[%s2466_s22 + $0x100] sm:$0xff]  ;;  %v151_v61 = vld [vmem:[%s2466_s22 + $0xf8] sm:$0xff]  ;;  %v150_v62 = vld [vmem:[%s2466_s22 + $0xf0] sm:$0xff] }
  0x24   : > { %381 = vadd.xlane.f32.xlu0 %v380_v11  ;;  %v473_v63 = vsel %vm376_vm0, %v152_v60, 0.0  ;;  %v470_v0 = vsel %vm376_vm0, %v151_v61, 0.0  ;;  %v467_v1 = vsel %vm376_vm0, %v150_v62, 0.0  ;;  %v155_v2 = vld [vmem:[%s2466_s22 + $0x118] sm:$0xff]  ;;  %v154_v3 = vld [vmem:[%s2466_s22 + $0x110] sm:$0xff]  ;;  %v153_v4 = vld [vmem:[%s2466_s22 + $0x108] sm:$0xff] }
  0x25   : > { %v482_v5 = vsel %vm376_vm0, %v155_v2, 0.0  ;;  %v479_v6 = vsel %vm376_vm0, %v154_v3, 0.0  ;;  %v476_v7 = vsel %vm376_vm0, %v153_v4, 0.0  ;;  %v158_v8 = vld [vmem:[%s2466_s22 + $0x130] sm:$0xff]  ;;  %v157_v9 = vld [vmem:[%s2466_s22 + $0x128] sm:$0xff]  ;;  %v156_v10 = vld [vmem:[%s2466_s22 + $0x120] sm:$0xff] }
  0x26   : > { %v491_v11 = vsel %vm376_vm0, %v158_v8, 0.0  ;;  %v488_v12 = vsel %vm376_vm0, %v157_v9, 0.0  ;;  %v485_v13 = vsel %vm376_vm0, %v156_v10, 0.0  ;;  %v161_v14 = vld [vmem:[%s2466_s22 + $0x148] sm:$0xff]  ;;  %v164_v20 = vld [vmem:[%s2466_s22 + $0x160] sm:$0xff]  ;;  %v167_v26 = vld [vmem:[%s2466_s22 + $0x178] sm:$0xff] }
  0x27   : > { %v165_v30 = vld [vmem:[%s2466_s22 + $0x168] sm:$0xff]  ;;  %v518_v32 = vsel %vm376_vm0, %v167_v26, 0.0  ;;  %v171_v48 = vld [vmem:[%s2466_s22 + $0x198] sm:$0xff]  ;;  %s2356_s5 = scalar_lea.hbm %s2355_s4, 16  ;;  %s2360_s13 = scalar_lea.hbm %s3964_s1, 32 }
  0x28   : > { %v169_v36 = vld [vmem:[%s2466_s22 + $0x188] sm:$0xff]  ;;  %v175_v54 = vld [vmem:[%s2466_s22 + $0x1b8] sm:$0xff]  ;;  %p2357_p11 = scmp.ne.s32.totalorder %s2355_s4, %s2356_s5  ;;  %p2362_p1 = scmp.lt.s32.totalorder %s2360_s13, %s2356_s5 }
  0x29   : > { %v524_v42 = vsel %vm376_vm0, %v169_v36, 0.0  ;;  %v173_v44 = vld [vmem:[%s2466_s22 + $0x1a8] sm:$0xff]  ;;  %v542_v60 = vsel %vm376_vm0, %v175_v54, 0.0  ;;  %v179_v62 = vld [vmem:[%s2466_s22 + $0x1d8] sm:$0xff] }
  0x2a   : > { %v536_v50 = vsel %vm376_vm0, %v173_v44, 0.0  ;;  %v177_v2 = vld [vmem:[%s2466_s22 + $0x1c8] sm:$0xff]  ;;  %v554_v4 = vsel %vm376_vm0, %v179_v62, 0.0  ;;  %v187_v26 = vld [vmem:[%s2466_s22 + $0x218] sm:$0xff]  ;;  %p2358_p12 = pnand %p2357_p11, %p2452_p5  ;;  %p2363_p2 = por %p2362_p1, %p2361_p0 }
  0x2b   : > { %402 = vadd.xlane.f32.xlu2 %v401_v15  ;;  %399 = vadd.xlane.f32.xlu1 %v398_v16  ;;  %v160_v15 = vld [vmem:[%s2466_s22 + $0x140] sm:$0xff]  ;;  %v159_v16 = vld [vmem:[%s2466_s22 + $0x138] sm:$0xff]  ;;  %v181_v8 = vld [vmem:[%s2466_s22 + $0x1e8] sm:$0xff] }
  0x2c   : > { %396 = vadd.xlane.f32.xlu0 %v395_v17  ;;  %v500_v17 = vsel %vm376_vm0, %v161_v14, 0.0  ;;  %v497_v18 = vsel %vm376_vm0, %v160_v15, 0.0  ;;  %v494_v19 = vsel %vm376_vm0, %v159_v16, 0.0  ;;  %v560_v14 = vsel %vm376_vm0, %v181_v8, 0.0  ;;  %v185_v16 = vld [vmem:[%s2466_s22 + $0x208] sm:$0xff]  ;;  %p2359_p13 = pneg %p2358_p12 }
  0x2d   : > { %v189_v44 = vld [vmem:[%s2466_s22 + $0x228] sm:$0xff] }
  0x2e   : > { %p2364_p3 = pnand %p2363_p2, %p2359_p13 }
  0x33   : > { %411 = vadd.xlane.f32.xlu2 %v410_v21  ;;  %408 = vadd.xlane.f32.xlu1 %v407_v22  ;;  %v163_v21 = vld [vmem:[%s2466_s22 + $0x158] sm:$0xff]  ;;  %v162_v22 = vld [vmem:[%s2466_s22 + $0x150] sm:$0xff] }
  0x34   : > { %405 = vadd.xlane.f32.xlu0 %v404_v23  ;;  %v509_v23 = vsel %vm376_vm0, %v164_v20, 0.0  ;;  %v506_v24 = vsel %vm376_vm0, %v163_v21, 0.0  ;;  %v503_v25 = vsel %vm376_vm0, %v162_v22, 0.0  ;;  %v183_v20 = vld [vmem:[%s2466_s22 + $0x1f8] sm:$0xff]  ;;  %v572_v22 = vsel %vm376_vm0, %v185_v16, 0.0 }
  0x35   : > { %v199_v16 = vld [vmem:[%s2466_s22 + $0x278] sm:$0xff] }
  0x3b   : > { %420 = vadd.xlane.f32.xlu2 %v419_v27  ;;  %417 = vadd.xlane.f32.xlu1 %v416_v28  ;;  %v166_v27 = vld [vmem:[%s2466_s22 + $0x170] sm:$0xff] }
  0x3c   : > { %414 = vadd.xlane.f32.xlu0 %v413_v29 }
  0x43   : > { %429 = vadd.xlane.f32.xlu2 %v428_v33  ;;  %426 = vadd.xlane.f32.xlu1 %v425_v34  ;;  %v515_v33 = vsel %vm376_vm0, %v166_v27, 0.0  ;;  %v512_v34 = vsel %vm376_vm0, %v165_v30, 0.0 }
  0x44   : > { %423 = vadd.xlane.f32.xlu0 %v422_v35  ;;  %v170_v35 = vld [vmem:[%s2466_s22 + $0x190] sm:$0xff] }
  0x4b   : > { %438 = vadd.xlane.f32.xlu2 %v437_v39  ;;  %435 = vadd.xlane.f32.xlu1 %v434_v40  ;;  %v168_v39 = vld [vmem:[%s2466_s22 + $0x180] sm:$0xff] }
  0x4c   : > { %432 = vadd.xlane.f32.xlu0 %v431_v41  ;;  %v527_v41 = vsel %vm376_vm0, %v170_v35, 0.0  ;;  %v521_v43 = vsel %vm376_vm0, %v168_v39, 0.0  ;;  %v578_v35 = vsel %vm376_vm0, %v187_v26, 0.0  ;;  %v191_v39 = vld [vmem:[%s2466_s22 + $0x238] sm:$0xff] }
  0x53   : > { %447 = vadd.xlane.f32.xlu2 %v446_v45  ;;  %444 = vadd.xlane.f32.xlu1 %v443_v46  ;;  %v172_v45 = vld [vmem:[%s2466_s22 + $0x1a0] sm:$0xff] }
  0x54   : > { %441 = vadd.xlane.f32.xlu0 %v440_v47 }
  0x5b   : > { %456 = vadd.xlane.f32.xlu2 %v455_v51  ;;  %453 = vadd.xlane.f32.xlu1 %v452_v52  ;;  %v533_v51 = vsel %vm376_vm0, %v172_v45, 0.0  ;;  %v530_v52 = vsel %vm376_vm0, %v171_v48, 0.0  ;;  %v590_v48 = vsel %vm376_vm0, %v191_v39, 0.0  ;;  %v201_v39 = vld [vmem:[%s2466_s22 + $0x288] sm:$0xff] }
  0x5c   : > { %450 = vadd.xlane.f32.xlu0 %v449_v53  ;;  %v176_v53 = vld [vmem:[%s2466_s22 + $0x1c0] sm:$0xff] }
  0x63   : > { %465 = vadd.xlane.f32.xlu2 %v464_v57  ;;  %462 = vadd.xlane.f32.xlu1 %v461_v58  ;;  %v174_v57 = vld [vmem:[%s2466_s22 + $0x1b0] sm:$0xff] }
  0x64   : > { %459 = vadd.xlane.f32.xlu0 %v458_v59  ;;  %v545_v59 = vsel %vm376_vm0, %v176_v53, 0.0  ;;  %v539_v61 = vsel %vm376_vm0, %v174_v57, 0.0  ;;  %v193_v53 = vld [vmem:[%s2466_s22 + $0x248] sm:$0xff] }
  0x65   : > { %v596_v62 = vsel %vm376_vm0, %v193_v53, 0.0 }
  0x6b   : > { %474 = vadd.xlane.f32.xlu2 %v473_v63  ;;  %471 = vadd.xlane.f32.xlu1 %v470_v0  ;;  %v178_v63 = vld [vmem:[%s2466_s22 + $0x1d0] sm:$0xff] }
  0x6c   : > { %468 = vadd.xlane.f32.xlu0 %v467_v1 }
  0x73   : > { %483 = vadd.xlane.f32.xlu2 %v482_v5  ;;  %480 = vadd.xlane.f32.xlu1 %v479_v6  ;;  %v551_v5 = vsel %vm376_vm0, %v178_v63, 0.0  ;;  %v548_v6 = vsel %vm376_vm0, %v177_v2, 0.0  ;;  %v197_v2 = vld [vmem:[%s2466_s22 + $0x268] sm:$0xff] }
  0x74   : > { %477 = vadd.xlane.f32.xlu0 %v476_v7  ;;  %v182_v7 = vld [vmem:[%s2466_s22 + $0x1f0] sm:$0xff] }
  0x7b   : > { %492 = vadd.xlane.f32.xlu2 %v491_v11  ;;  %489 = vadd.xlane.f32.xlu1 %v488_v12  ;;  %v180_v11 = vld [vmem:[%s2466_s22 + $0x1e0] sm:$0xff] }
  0x7c   : > { %486 = vadd.xlane.f32.xlu0 %v485_v13  ;;  %v563_v13 = vsel %vm376_vm0, %v182_v7, 0.0  ;;  %v557_v15 = vsel %vm376_vm0, %v180_v11, 0.0  ;;  %v195_v7 = vld [vmem:[%s2466_s22 + $0x258] sm:$0xff]  ;;  %v608_v11 = vsel %vm376_vm0, %v197_v2, 0.0 }
  0x83   : > { %501 = vadd.xlane.f32.xlu2 %v500_v17  ;;  %498 = vadd.xlane.f32.xlu1 %v497_v18  ;;  %v184_v17 = vld [vmem:[%s2466_s22 + $0x200] sm:$0xff] }
  0x84   : > { %495 = vadd.xlane.f32.xlu0 %v494_v19 }
  0x8b   : > { %510 = vadd.xlane.f32.xlu2 %v509_v23  ;;  %507 = vadd.xlane.f32.xlu1 %v506_v24  ;;  %v569_v23 = vsel %vm376_vm0, %v184_v17, 0.0  ;;  %v566_v24 = vsel %vm376_vm0, %v183_v20, 0.0 }
  0x8c   : > { %504 = vadd.xlane.f32.xlu0 %v503_v25  ;;  %v188_v25 = vld [vmem:[%s2466_s22 + $0x220] sm:$0xff] }
  0x8e   : > { %v2560_v28 = vpop.xlane.xlu2 %390  ;;  %v2562_v29 = vpop.xlane.xlu1 %384 }
  0x8f   : > { %v2565_v31 = vpop.xlane.xlu0 %378 }
  0x93   : > { %519 = vadd.xlane.f32.xlu2 %v518_v32  ;;  %516 = vadd.xlane.f32.xlu1 %v515_v33  ;;  %v186_v32 = vld [vmem:[%s2466_s22 + $0x210] sm:$0xff] }
  0x94   : > { %513 = vadd.xlane.f32.xlu0 %v512_v34  ;;  %v581_v34 = vsel %vm376_vm0, %v188_v25, 0.0  ;;  %v575_v36 = vsel %vm376_vm0, %v186_v32, 0.0  ;;  %v614_v25 = vsel %vm376_vm0, %v199_v16, 0.0  ;;  %v203_v32 = vld [vmem:[%s2466_s22 + $0x298] sm:$0xff] }
  0x96   : > { %v2572_v37 = vpop.xlane.xlu2 %393  ;;  %v2574_v38 = vpop.xlane.xlu1 %387 }
  0x97   : > { %v2577_v40 = vpop.xlane.xlu0 %381 }
  0x9b   : > { %528 = vadd.xlane.f32.xlu2 %v527_v41  ;;  %525 = vadd.xlane.f32.xlu1 %v524_v42  ;;  %v190_v41 = vld [vmem:[%s2466_s22 + $0x230] sm:$0xff] }
  0x9c   : > { %522 = vadd.xlane.f32.xlu0 %v521_v43 }
  0x9e   : > { %v2584_v46 = vpop.xlane.xlu2 %402  ;;  %v2586_v47 = vpop.xlane.xlu1 %399 }
  0x9f   : > { %v2589_v49 = vpop.xlane.xlu0 %396 }
  0xa3   : > { %537 = vadd.xlane.f32.xlu2 %v536_v50  ;;  %534 = vadd.xlane.f32.xlu1 %v533_v51  ;;  %v587_v50 = vsel %vm376_vm0, %v190_v41, 0.0  ;;  %v584_v51 = vsel %vm376_vm0, %v189_v44, 0.0  ;;  %v626_v44 = vsel %vm376_vm0, %v203_v32, 0.0  ;;  %v211_v32 = vld [vmem:[%s2466_s22 + $0x2d8] sm:$0xff] }
  0xa4   : > { %531 = vadd.xlane.f32.xlu0 %v530_v52  ;;  %v194_v52 = vld [vmem:[%s2466_s22 + $0x250] sm:$0xff] }
  0xa6   : > { %v2596_v55 = vpop.xlane.xlu2 %411  ;;  %v2598_v56 = vpop.xlane.xlu1 %408 }
  0xa7   : > { %v2601_v58 = vpop.xlane.xlu0 %405 }
  0xab   : > { %546 = vadd.xlane.f32.xlu2 %v545_v59  ;;  %543 = vadd.xlane.f32.xlu1 %v542_v60  ;;  %v192_v59 = vld [vmem:[%s2466_s22 + $0x240] sm:$0xff] }
  0xac   : > { %540 = vadd.xlane.f32.xlu0 %v539_v61  ;;  %v599_v61 = vsel %vm376_vm0, %v194_v52, 0.0  ;;  %v593_v63 = vsel %vm376_vm0, %v192_v59, 0.0  ;;  %v205_v52 = vld [vmem:[%s2466_s22 + $0x2a8] sm:$0xff] }
  0xad   : > { %v632_v2 = vsel %vm376_vm0, %v205_v52, 0.0 }
  0xae   : > { %v2608_v0 = vpop.xlane.xlu2 %420  ;;  %v2610_v1 = vpop.xlane.xlu1 %417 }
  0xaf   : > { %v2613_v3 = vpop.xlane.xlu0 %414 }
  0xb3   : > { %555 = vadd.xlane.f32.xlu2 %v554_v4  ;;  %552 = vadd.xlane.f32.xlu1 %v551_v5  ;;  %v196_v4 = vld [vmem:[%s2466_s22 + $0x260] sm:$0xff] }
  0xb4   : > { %549 = vadd.xlane.f32.xlu0 %v548_v6 }
  0xb6   : > { %v2620_v9 = vpop.xlane.xlu2 %429  ;;  %v2622_v10 = vpop.xlane.xlu1 %426 }
  0xb7   : > { %v2625_v12 = vpop.xlane.xlu0 %423 }
  0xbb   : > { %564 = vadd.xlane.f32.xlu2 %v563_v13  ;;  %561 = vadd.xlane.f32.xlu1 %v560_v14  ;;  %v605_v13 = vsel %vm376_vm0, %v196_v4, 0.0  ;;  %v602_v14 = vsel %vm376_vm0, %v195_v7, 0.0  ;;  %v209_v7 = vld [vmem:[%s2466_s22 + $0x2c8] sm:$0xff] }
  0xbc   : > { %558 = vadd.xlane.f32.xlu0 %v557_v15  ;;  %v200_v15 = vld [vmem:[%s2466_s22 + $0x280] sm:$0xff] }
  0xbe   : > { %v2632_v18 = vpop.xlane.xlu2 %438  ;;  %v2634_v19 = vpop.xlane.xlu1 %435 }
  0xbf   : > { %v2637_v21 = vpop.xlane.xlu0 %432 }
  0xc3   : > { %573 = vadd.xlane.f32.xlu2 %v572_v22  ;;  %570 = vadd.xlane.f32.xlu1 %v569_v23  ;;  %v198_v22 = vld [vmem:[%s2466_s22 + $0x270] sm:$0xff] }
  0xc4   : > { %567 = vadd.xlane.f32.xlu0 %v566_v24  ;;  %v617_v24 = vsel %vm376_vm0, %v200_v15, 0.0  ;;  %v611_v26 = vsel %vm376_vm0, %v198_v22, 0.0  ;;  %v207_v15 = vld [vmem:[%s2466_s22 + $0x2b8] sm:$0xff]  ;;  %v644_v22 = vsel %vm376_vm0, %v209_v7, 0.0  ;;  %v213_v7 = vld [vmem:[%s2466_s22 + $0x2e8] sm:$0xff] }
  0xc6   : > { %v2644_v27 = vpop.xlane.xlu2 %447  ;;  %v2646_v30 = vpop.xlane.xlu1 %444 }
  0xc7   : > { %3975 = vst [vmem:[#allocation5_spill] sm:$0xff] %v2644_v27  ;;  %v2649_v33 = vpop.xlane.xlu0 %441 }
  0xc8   : > { %3976 = vst [vmem:[#allocation6_spill] sm:$0xff] %v2646_v30 }
  0xc9   : > { %3977 = vst [vmem:[#allocation7_spill] sm:$0xff] %v2649_v33 }
  0xcb   : > { %582 = vadd.xlane.f32.xlu2 %v581_v34  ;;  %579 = vadd.xlane.f32.xlu1 %v578_v35  ;;  %v202_v34 = vld [vmem:[%s2466_s22 + $0x290] sm:$0xff] }
  0xcc   : > { %576 = vadd.xlane.f32.xlu0 %v575_v36 }
  0xce   : > { %v2656_v42 = vpop.xlane.xlu2 %456  ;;  %v2658_v43 = vpop.xlane.xlu1 %453 }
  0xcf   : > { %3978 = vst [vmem:[#allocation8_spill] sm:$0xff] %v2656_v42  ;;  %v2661_v45 = vpop.xlane.xlu0 %450 }
  0xd0   : > { %3979 = vst [vmem:[#allocation9_spill] sm:$0xff] %v2658_v43 }
  0xd1   : > { %3980 = vst [vmem:[#allocation10_spill] sm:$0xff] %v2661_v45  ;;  %v237_v45 = vld [vmem:[%s2466_s22 + $0x3a8] sm:$0xff] }
  0xd3   : > { %591 = vadd.xlane.f32.xlu2 %v590_v48  ;;  %588 = vadd.xlane.f32.xlu1 %v587_v50  ;;  %v623_v48 = vsel %vm376_vm0, %v202_v34, 0.0  ;;  %v620_v50 = vsel %vm376_vm0, %v201_v39, 0.0 }
  0xd4   : > { %585 = vadd.xlane.f32.xlu0 %v584_v51  ;;  %v206_v51 = vld [vmem:[%s2466_s22 + $0x2b0] sm:$0xff] }
  0xd6   : > { %v2668_v54 = vpop.xlane.xlu2 %465  ;;  %v2670_v57 = vpop.xlane.xlu1 %462 }
  0xd7   : > { %3981 = vst [vmem:[#allocation11_spill] sm:$0xff] %v2668_v54  ;;  %v2673_v60 = vpop.xlane.xlu0 %459  ;;  %v222_v54 = vld [vmem:[%s2466_s22 + $0x330] sm:$0xff] }
  0xd8   : > { %3982 = vst [vmem:[#allocation12_spill] sm:$0xff] %v2670_v57 }
  0xd9   : > { %3983 = vst [vmem:[#allocation13_spill] sm:$0xff] %v2673_v60 }
  0xdb   : > { %600 = vadd.xlane.f32.xlu2 %v599_v61  ;;  %597 = vadd.xlane.f32.xlu1 %v596_v62  ;;  %v204_v61 = vld [vmem:[%s2466_s22 + $0x2a0] sm:$0xff] }
  0xdc   : > { %594 = vadd.xlane.f32.xlu0 %v593_v63  ;;  %v635_v63 = vsel %vm376_vm0, %v206_v51, 0.0  ;;  %v629_v4 = vsel %vm376_vm0, %v204_v61, 0.0  ;;  %v650_v51 = vsel %vm376_vm0, %v211_v32, 0.0  ;;  %v215_v61 = vld [vmem:[%s2466_s22 + $0x2f8] sm:$0xff] }
  0xde   : > { %v2680_v5 = vpop.xlane.xlu2 %474  ;;  %v2682_v6 = vpop.xlane.xlu1 %471 }
  0xdf   : > { %3984 = vst [vmem:[#allocation14_spill] sm:$0xff] %v2682_v6  ;;  %v2685_v8 = vpop.xlane.xlu0 %468  ;;  %v219_v6 = vld [vmem:[%s2466_s22 + $0x318] sm:$0xff] }
  0xe0   : > { %3985 = vst [vmem:[#allocation15_spill] sm:$0xff] %v2685_v8 }
  0xe3   : > { %609 = vadd.xlane.f32.xlu2 %v608_v11  ;;  %606 = vadd.xlane.f32.xlu1 %v605_v13  ;;  %v208_v11 = vld [vmem:[%s2466_s22 + $0x2c0] sm:$0xff] }
  0xe4   : > { %603 = vadd.xlane.f32.xlu0 %v602_v14 }
  0xe6   : > { %v2692_v17 = vpop.xlane.xlu2 %483  ;;  %v2694_v20 = vpop.xlane.xlu1 %480 }
  0xe7   : > { %v2697_v23 = vpop.xlane.xlu0 %477 }
  0xeb   : > { %618 = vadd.xlane.f32.xlu2 %v617_v24  ;;  %615 = vadd.xlane.f32.xlu1 %v614_v25  ;;  %v641_v24 = vsel %vm376_vm0, %v208_v11, 0.0  ;;  %v638_v25 = vsel %vm376_vm0, %v207_v15, 0.0  ;;  %v662_v15 = vsel %vm376_vm0, %v215_v61, 0.0 }
  0xec   : > { %612 = vadd.xlane.f32.xlu0 %v611_v26  ;;  %v212_v26 = vld [vmem:[%s2466_s22 + $0x2e0] sm:$0xff] }
  0xee   : > { %v2704_v35 = vpop.xlane.xlu2 %492  ;;  %v2706_v36 = vpop.xlane.xlu1 %489 }
  0xef   : > { %v2709_v41 = vpop.xlane.xlu0 %486 }
  0xf3   : > { %627 = vadd.xlane.f32.xlu2 %v626_v44  ;;  %624 = vadd.xlane.f32.xlu1 %v623_v48  ;;  %v210_v44 = vld [vmem:[%s2466_s22 + $0x2d0] sm:$0xff] }
  0xf4   : > { %621 = vadd.xlane.f32.xlu0 %v620_v50  ;;  %v653_v50 = vsel %vm376_vm0, %v212_v26, 0.0  ;;  %v647_v52 = vsel %vm376_vm0, %v210_v44, 0.0  ;;  %v217_v26 = vld [vmem:[%s2466_s22 + $0x308] sm:$0xff] }
  0xf5   : > { %v668_v61 = vsel %vm376_vm0, %v217_v26, 0.0 }
  0xf6   : > { %v2716_v53 = vpop.xlane.xlu2 %501  ;;  %v2718_v59 = vpop.xlane.xlu1 %498 }
  0xf7   : > { %3986 = vst [vmem:[#allocation16_spill] sm:$0xff] %v2716_v53  ;;  %v2721_v62 = vpop.xlane.xlu0 %495 }
  0xf8   : > { %3987 = vst [vmem:[#allocation17_spill] sm:$0xff] %v2718_v59 }
  0xf9   : > { %3988 = vst [vmem:[#allocation18_spill] sm:$0xff] %v2721_v62 }
  0xfb   : > { %636 = vadd.xlane.f32.xlu2 %v635_v63  ;;  %633 = vadd.xlane.f32.xlu1 %v632_v2  ;;  %v214_v63 = vld [vmem:[%s2466_s22 + $0x2f0] sm:$0xff] }
  0xfc   : > { %630 = vadd.xlane.f32.xlu0 %v629_v4 }
  0xfe   : > { %v2728_v13 = vpop.xlane.xlu2 %510  ;;  %v2730_v14 = vpop.xlane.xlu1 %507 }
  0xff   : > { %3989 = vst [vmem:[#allocation19_spill] sm:$0xff] %v2728_v13  ;;  %v2733_v16 = vpop.xlane.xlu0 %504 }
 0x100   : > { %3990 = vst [vmem:[#allocation20_spill] sm:$0xff] %v2730_v14 }
 0x101   : > { %3991 = vst [vmem:[#allocation21_spill] sm:$0xff] %v2733_v16 }
 0x103   : > { %645 = vadd.xlane.f32.xlu2 %v644_v22  ;;  %642 = vadd.xlane.f32.xlu1 %v641_v24  ;;  %v659_v22 = vsel %vm376_vm0, %v214_v63, 0.0  ;;  %v656_v24 = vsel %vm376_vm0, %v213_v7, 0.0  ;;  %v221_v7 = vld [vmem:[%s2466_s22 + $0x328] sm:$0xff] }
 0x104   : > { %639 = vadd.xlane.f32.xlu0 %v638_v25  ;;  %v218_v25 = vld [vmem:[%s2466_s22 + $0x310] sm:$0xff] }
 0x106   : > { %v2740_v34 = vpop.xlane.xlu2 %519  ;;  %v2742_v39 = vpop.xlane.xlu1 %516 }
 0x107   : > { %3992 = vst [vmem:[#allocation22_spill] sm:$0xff] %v2740_v34  ;;  %v2745_v48 = vpop.xlane.xlu0 %513  ;;  %v265_v34 = vld [vmem:[%s2466_s22 + $0x488] sm:$0xff] }
 0x108   : > { %3993 = vst [vmem:[#allocation23_spill] sm:$0xff] %v2742_v39  ;;  %v266_v39 = vld [vmem:[%s2466_s22 + $0x490] sm:$0xff] }
 0x109   : > { %3994 = vst [vmem:[#allocation24_spill] sm:$0xff] %v2745_v48 }
 0x10b   : > { %654 = vadd.xlane.f32.xlu2 %v653_v50  ;;  %651 = vadd.xlane.f32.xlu1 %v650_v51  ;;  %v216_v50 = vld [vmem:[%s2466_s22 + $0x300] sm:$0xff] }
 0x10c   : > { %648 = vadd.xlane.f32.xlu0 %v647_v52  ;;  %v671_v52 = vsel %vm376_vm0, %v218_v25, 0.0  ;;  %v665_v63 = vsel %vm376_vm0, %v216_v50, 0.0  ;;  %v680_v25 = vsel %vm376_vm0, %v221_v7, 0.0  ;;  %v674_v50 = vsel %vm376_vm0, %v219_v6, 0.0 }
 0x10d   : > { %v683_v6 = vsel %vm376_vm0, %v222_v54, 0.0 }
 0x10e   : > { %v2752_v2 = vpop.xlane.xlu2 %528  ;;  %v2754_v4 = vpop.xlane.xlu1 %525 }
 0x10f   : > { %3995 = vst [vmem:[#allocation25_spill] sm:$0xff] %v2752_v2  ;;  %v2757_v11 = vpop.xlane.xlu0 %522  ;;  %v240_v2 = vld [vmem:[%s2466_s22 + $0x3c0] sm:$0xff] }
 0x110   : > { %3996 = vst [vmem:[#allocation26_spill] sm:$0xff] %v2754_v4  ;;  %v243_v4 = vld [vmem:[%s2466_s22 + $0x3d8] sm:$0xff] }
 0x111   : > { %3997 = vst [vmem:[#allocation27_spill] sm:$0xff] %v2757_v11 }
 0x113   : > { %663 = vadd.xlane.f32.xlu2 %v662_v15  ;;  %660 = vadd.xlane.f32.xlu1 %v659_v22  ;;  %v220_v15 = vld [vmem:[%s2466_s22 + $0x320] sm:$0xff] }
 0x114   : > { %657 = vadd.xlane.f32.xlu0 %v656_v24  ;;  %v677_v26 = vsel %vm376_vm0, %v220_v15, 0.0 }
 0x116   : > { %v2764_v32 = vpop.xlane.xlu2 %537  ;;  %v2766_v44 = vpop.xlane.xlu1 %534 }
 0x117   : > { %3998 = vst [vmem:[#allocation28_spill] sm:$0xff] %v2764_v32  ;;  %v2769_v51 = vpop.xlane.xlu0 %531 }
 0x118   : > { %3999 = vst [vmem:[#allocation29_spill] sm:$0xff] %v2766_v44  ;;  %v234_v44 = vld [vmem:[%s2466_s22 + $0x390] sm:$0xff] }
 0x119   : > { %4000 = vst [vmem:[#allocation30_spill] sm:$0xff] %v2769_v51 }
 0x11b   : > { %672 = vadd.xlane.f32.xlu2 %v671_v52  ;;  %669 = vadd.xlane.f32.xlu1 %v668_v61  ;;  %v224_v52 = vld [vmem:[%s2466_s22 + $0x340] sm:$0xff]  ;;  %v223_v61 = vld [vmem:[%s2466_s22 + $0x338] sm:$0xff] }
 0x11c   : > { %666 = vadd.xlane.f32.xlu0 %v665_v63  ;;  %v689_v7 = vsel %vm376_vm0, %v224_v52, 0.0  ;;  %v686_v15 = vsel %vm376_vm0, %v223_v61, 0.0 }
 0x11e   : > { %v2776_v22 = vpop.xlane.xlu2 %546  ;;  %v2778_v24 = vpop.xlane.xlu1 %543 }
 0x11f   : > { %4001 = vst [vmem:[#allocation31_spill] sm:$0xff] %v2776_v22  ;;  %v2781_v8 = vpop.xlane.xlu0 %540 }
 0x120   : > { %4002 = vst [vmem:[#allocation32_spill] sm:$0xff] %v2778_v24  ;;  %v231_v24 = vld [vmem:[%s2466_s22 + $0x378] sm:$0xff] }
 0x121   : > { %4003 = vst [vmem:[#allocation33_spill] sm:$0xff] %v2781_v8 }
 0x123   : > { %681 = vadd.xlane.f32.xlu2 %v680_v25  ;;  %678 = vadd.xlane.f32.xlu1 %v677_v26  ;;  %v227_v25 = vld [vmem:[%s2466_s22 + $0x358] sm:$0xff]  ;;  %v226_v26 = vld [vmem:[%s2466_s22 + $0x350] sm:$0xff] }
 0x124   : > { %675 = vadd.xlane.f32.xlu0 %v674_v50  ;;  %v698_v52 = vsel %vm376_vm0, %v227_v25, 0.0  ;;  %v695_v61 = vsel %vm376_vm0, %v226_v26, 0.0 }
 0x126   : > { %v2788_v63 = vpop.xlane.xlu2 %555  ;;  %v2790_v57 = vpop.xlane.xlu1 %552 }
 0x127   : > { %4004 = vst [vmem:[#allocation34_spill] sm:$0xff] %v2788_v63  ;;  %v2793_v60 = vpop.xlane.xlu0 %549 }
 0x128   : > { %4005 = vst [vmem:[#allocation35_spill] sm:$0xff] %v2790_v57  ;;  %v225_v57 = vld [vmem:[%s2466_s22 + $0x348] sm:$0xff] }
 0x129   : > { %4006 = vst [vmem:[#allocation36_spill] sm:$0xff] %v2793_v60  ;;  %v692_v54 = vsel %vm376_vm0, %v225_v57, 0.0 }
 0x12b   : > { %690 = vadd.xlane.f32.xlu2 %v689_v7  ;;  %687 = vadd.xlane.f32.xlu1 %v686_v15  ;;  %v230_v7 = vld [vmem:[%s2466_s22 + $0x370] sm:$0xff]  ;;  %v229_v15 = vld [vmem:[%s2466_s22 + $0x368] sm:$0xff] }
 0x12c   : > { %684 = vadd.xlane.f32.xlu0 %v683_v6  ;;  %v707_v25 = vsel %vm376_vm0, %v230_v7, 0.0  ;;  %v704_v26 = vsel %vm376_vm0, %v229_v15, 0.0 }
 0x12e   : > { %v2800_v50 = vpop.xlane.xlu2 %564  ;;  %v2802_v63 = vpop.xlane.xlu1 %561 }
 0x12f   : > { %4007 = vst [vmem:[#allocation37_spill] sm:$0xff] %v2800_v50  ;;  %v2805_v60 = vpop.xlane.xlu0 %558 }
 0x130   : > { %4008 = vst [vmem:[#allocation38_spill] sm:$0xff] %v2802_v63  ;;  %v228_v63 = vld [vmem:[%s2466_s22 + $0x360] sm:$0xff] }
 0x131   : > { %4009 = vst [vmem:[#allocation39_spill] sm:$0xff] %v2805_v60  ;;  %v701_v57 = vsel %vm376_vm0, %v228_v63, 0.0  ;;  %v710_v63 = vsel %vm376_vm0, %v231_v24, 0.0  ;;  %v719_v24 = vsel %vm376_vm0, %v234_v44, 0.0  ;;  %v728_v44 = vsel %vm376_vm0, %v237_v45, 0.0 }
 0x132   : > { %v737_v45 = vsel %vm376_vm0, %v240_v2, 0.0  ;;  %v746_v2 = vsel %vm376_vm0, %v243_v4, 0.0 }
 0x133   : > { %699 = vadd.xlane.f32.xlu2 %v698_v52  ;;  %696 = vadd.xlane.f32.xlu1 %v695_v61  ;;  %v233_v52 = vld [vmem:[%s2466_s22 + $0x388] sm:$0xff]  ;;  %v232_v61 = vld [vmem:[%s2466_s22 + $0x380] sm:$0xff] }
 0x134   : > { %693 = vadd.xlane.f32.xlu0 %v692_v54  ;;  %v716_v7 = vsel %vm376_vm0, %v233_v52, 0.0  ;;  %v713_v15 = vsel %vm376_vm0, %v232_v61, 0.0 }
 0x136   : > { %v2812_v6 = vpop.xlane.xlu2 %573  ;;  %v2814_v50 = vpop.xlane.xlu1 %570 }
 0x137   : > { %v2817_v60 = vpop.xlane.xlu0 %567 }
 0x138   : > { %4010 = vst [vmem:[#allocation40_spill] sm:$0xff] %v2817_v60 }
 0x13b   : > { %708 = vadd.xlane.f32.xlu2 %v707_v25  ;;  %705 = vadd.xlane.f32.xlu1 %v704_v26  ;;  %v236_v25 = vld [vmem:[%s2466_s22 + $0x3a0] sm:$0xff]  ;;  %v235_v26 = vld [vmem:[%s2466_s22 + $0x398] sm:$0xff] }
 0x13c   : > { %702 = vadd.xlane.f32.xlu0 %v701_v57  ;;  %v725_v52 = vsel %vm376_vm0, %v236_v25, 0.0  ;;  %v722_v61 = vsel %vm376_vm0, %v235_v26, 0.0 }
 0x13e   : > { %v2824_v54 = vpop.xlane.xlu2 %582  ;;  %v2826_v22 = vpop.xlane.xlu1 %579 }
 0x13f   : > { %4011 = vst [vmem:[#allocation41_spill] sm:$0xff] %v2824_v54  ;;  %v2829_v60 = vpop.xlane.xlu0 %576 }
 0x140   : > { %4012 = vst [vmem:[#allocation42_spill] sm:$0xff] %v2826_v22 }
 0x141   : > { %4013 = vst [vmem:[#allocation43_spill] sm:$0xff] %v2829_v60 }
 0x143   : > { %717 = vadd.xlane.f32.xlu2 %v716_v7  ;;  %714 = vadd.xlane.f32.xlu1 %v713_v15  ;;  %v239_v7 = vld [vmem:[%s2466_s22 + $0x3b8] sm:$0xff]  ;;  %v238_v15 = vld [vmem:[%s2466_s22 + $0x3b0] sm:$0xff] }
 0x144   : > { %711 = vadd.xlane.f32.xlu0 %v710_v63  ;;  %v734_v25 = vsel %vm376_vm0, %v239_v7, 0.0  ;;  %v731_v26 = vsel %vm376_vm0, %v238_v15, 0.0 }
 0x146   : > { %v2836_v57 = vpop.xlane.xlu2 %591  ;;  %v2838_v8 = vpop.xlane.xlu1 %588 }
 0x147   : > { %4014 = vst [vmem:[#allocation44_spill] sm:$0xff] %v2836_v57  ;;  %v2841_v32 = vpop.xlane.xlu0 %585  ;;  %v268_v57 = vld [vmem:[%s2466_s22 + $0x4a0] sm:$0xff] }
 0x148   : > { %4015 = vst [vmem:[#allocation45_spill] sm:$0xff] %v2838_v8  ;;  %v270_v8 = vld [vmem:[%s2466_s22 + $0x4b0] sm:$0xff] }
 0x149   : > { %4016 = vst [vmem:[#allocation46_spill] sm:$0xff] %v2841_v32 }
 0x14b   : > { %726 = vadd.xlane.f32.xlu2 %v725_v52  ;;  %723 = vadd.xlane.f32.xlu1 %v722_v61  ;;  %v242_v52 = vld [vmem:[%s2466_s22 + $0x3d0] sm:$0xff]  ;;  %v241_v61 = vld [vmem:[%s2466_s22 + $0x3c8] sm:$0xff] }
 0x14c   : > { %720 = vadd.xlane.f32.xlu0 %v719_v24  ;;  %v743_v7 = vsel %vm376_vm0, %v242_v52, 0.0  ;;  %v740_v15 = vsel %vm376_vm0, %v241_v61, 0.0 }
 0x14e   : > { %v2848_v63 = vpop.xlane.xlu2 %600  ;;  %v2850_v51 = vpop.xlane.xlu1 %597 }
 0x14f   : > { %4017 = vst [vmem:[#allocation47_spill] sm:$0xff] %v2848_v63  ;;  %v2853_v43 = vpop.xlane.xlu0 %594 }
 0x150   : > { %4018 = vst [vmem:[#allocation48_spill] sm:$0xff] %v2850_v51 }
 0x151   : > { %4019 = vst [vmem:[#allocation49_spill] sm:$0xff] %v2853_v43  ;;  %v269_v43 = vld [vmem:[%s2466_s22 + $0x4a8] sm:$0xff] }
 0x153   : > { %735 = vadd.xlane.f32.xlu2 %v734_v25  ;;  %732 = vadd.xlane.f32.xlu1 %v731_v26  ;;  %v245_v25 = vld [vmem:[%s2466_s22 + $0x3e8] sm:$0xff]  ;;  %v244_v26 = vld [vmem:[%s2466_s22 + $0x3e0] sm:$0xff] }
 0x154   : > { %729 = vadd.xlane.f32.xlu0 %v728_v44  ;;  %v752_v52 = vsel %vm376_vm0, %v245_v25, 0.0  ;;  %v749_v61 = vsel %vm376_vm0, %v244_v26, 0.0 }
 0x156   : > { %v2860_v24 = vpop.xlane.xlu2 %609  ;;  %v2862_v42 = vpop.xlane.xlu1 %606 }
 0x157   : > { %4020 = vst [vmem:[#allocation50_spill] sm:$0xff] %v2860_v24  ;;  %v2865_v11 = vpop.xlane.xlu0 %603 }
 0x158   : > { %4021 = vst [vmem:[#allocation51_spill] sm:$0xff] %v2862_v42 }
 0x159   : > { %4022 = vst [vmem:[#allocation52_spill] sm:$0xff] %v2865_v11  ;;  %v261_v11 = vld [vmem:[%s2466_s22 + $0x468] sm:$0xff] }
 0x15b   : > { %744 = vadd.xlane.f32.xlu2 %v743_v7  ;;  %741 = vadd.xlane.f32.xlu1 %v740_v15  ;;  %v248_v7 = vld [vmem:[%s2466_s22 + $0x400] sm:$0xff]  ;;  %v247_v15 = vld [vmem:[%s2466_s22 + $0x3f8] sm:$0xff] }
 0x15c   : > { %738 = vadd.xlane.f32.xlu0 %v737_v45  ;;  %v761_v25 = vsel %vm376_vm0, %v248_v7, 0.0  ;;  %v758_v26 = vsel %vm376_vm0, %v247_v15, 0.0 }
 0x15e   : > { %v2872_v44 = vpop.xlane.xlu2 %618  ;;  %v2874_v24 = vpop.xlane.xlu1 %615 }
 0x15f   : > { %4023 = vst [vmem:[#allocation53_spill] sm:$0xff] %v2872_v44  ;;  %v2877_v42 = vpop.xlane.xlu0 %612 }
 0x160   : > { %4024 = vst [vmem:[#allocation54_spill] sm:$0xff] %v2874_v24  ;;  %v246_v24 = vld [vmem:[%s2466_s22 + $0x3f0] sm:$0xff] }
 0x161   : > { %4025 = vst [vmem:[#allocation55_spill] sm:$0xff] %v2877_v42  ;;  %v755_v4 = vsel %vm376_vm0, %v246_v24, 0.0 }
 0x163   : > { %753 = vadd.xlane.f32.xlu2 %v752_v52  ;;  %750 = vadd.xlane.f32.xlu1 %v749_v61  ;;  %v251_v52 = vld [vmem:[%s2466_s22 + $0x418] sm:$0xff]  ;;  %v250_v61 = vld [vmem:[%s2466_s22 + $0x410] sm:$0xff] }
 0x164   : > { %747 = vadd.xlane.f32.xlu0 %v746_v2  ;;  %v770_v7 = vsel %vm376_vm0, %v251_v52, 0.0  ;;  %v767_v15 = vsel %vm376_vm0, %v250_v61, 0.0 }
 0x166   : > { %v2884_v45 = vpop.xlane.xlu2 %627  ;;  %v2886_v44 = vpop.xlane.xlu1 %624 }
 0x167   : > { %4026 = vst [vmem:[#allocation56_spill] sm:$0xff] %v2884_v45  ;;  %v2889_v42 = vpop.xlane.xlu0 %621 }
 0x168   : > { %4027 = vst [vmem:[#allocation57_spill] sm:$0xff] %v2886_v44  ;;  %v249_v44 = vld [vmem:[%s2466_s22 + $0x408] sm:$0xff] }
 0x169   : > { %4028 = vst [vmem:[#allocation58_spill] sm:$0xff] %v2889_v42  ;;  %v764_v24 = vsel %vm376_vm0, %v249_v44, 0.0 }
 0x16b   : > { %762 = vadd.xlane.f32.xlu2 %v761_v25  ;;  %759 = vadd.xlane.f32.xlu1 %v758_v26  ;;  %v254_v25 = vld [vmem:[%s2466_s22 + $0x430] sm:$0xff]  ;;  %v253_v26 = vld [vmem:[%s2466_s22 + $0x428] sm:$0xff] }
 0x16c   : > { %756 = vadd.xlane.f32.xlu0 %v755_v4  ;;  %v779_v52 = vsel %vm376_vm0, %v254_v25, 0.0  ;;  %v776_v61 = vsel %vm376_vm0, %v253_v26, 0.0 }
 0x16e   : > { %v2896_v2 = vpop.xlane.xlu2 %636  ;;  %v2898_v45 = vpop.xlane.xlu1 %633 }
 0x16f   : > { %4029 = vst [vmem:[#allocation59_spill] sm:$0xff] %v2896_v2  ;;  %v2901_v42 = vpop.xlane.xlu0 %630 }
 0x170   : > { %4030 = vst [vmem:[#allocation60_spill] sm:$0xff] %v2898_v45  ;;  %v252_v45 = vld [vmem:[%s2466_s22 + $0x420] sm:$0xff] }
 0x171   : > { %4031 = vst [vmem:[#allocation61_spill] sm:$0xff] %v2901_v42  ;;  %v773_v44 = vsel %vm376_vm0, %v252_v45, 0.0 }
 0x173   : > { %771 = vadd.xlane.f32.xlu2 %v770_v7  ;;  %768 = vadd.xlane.f32.xlu1 %v767_v15  ;;  %v257_v7 = vld [vmem:[%s2466_s22 + $0x448] sm:$0xff]  ;;  %v256_v15 = vld [vmem:[%s2466_s22 + $0x440] sm:$0xff] }
 0x174   : > { %765 = vadd.xlane.f32.xlu0 %v764_v24  ;;  %v788_v25 = vsel %vm376_vm0, %v257_v7, 0.0  ;;  %v785_v26 = vsel %vm376_vm0, %v256_v15, 0.0 }
 0x176   : > { %v2908_v4 = vpop.xlane.xlu2 %645  ;;  %v2910_v2 = vpop.xlane.xlu1 %642 }
 0x177   : > { %4032 = vst [vmem:[#allocation62_spill] sm:$0xff] %v2908_v4  ;;  %v2913_v42 = vpop.xlane.xlu0 %639 }
 0x178   : > { %4033 = vst [vmem:[#allocation63_spill] sm:$0xff] %v2910_v2  ;;  %v255_v2 = vld [vmem:[%s2466_s22 + $0x438] sm:$0xff] }
 0x179   : > { %4034 = vst [vmem:[#allocation64_spill] sm:$0xff] %v2913_v42  ;;  %v782_v45 = vsel %vm376_vm0, %v255_v2, 0.0 }
 0x17b   : > { %780 = vadd.xlane.f32.xlu2 %v779_v52  ;;  %777 = vadd.xlane.f32.xlu1 %v776_v61  ;;  %v260_v52 = vld [vmem:[%s2466_s22 + $0x460] sm:$0xff]  ;;  %v259_v61 = vld [vmem:[%s2466_s22 + $0x458] sm:$0xff] }
 0x17c   : > { %774 = vadd.xlane.f32.xlu0 %v773_v44  ;;  %v797_v7 = vsel %vm376_vm0, %v260_v52, 0.0  ;;  %v794_v15 = vsel %vm376_vm0, %v259_v61, 0.0  ;;  %v800_v61 = vsel %vm376_vm0, %v261_v11, 0.0 }
 0x17e   : > { %v2920_v24 = vpop.xlane.xlu2 %654  ;;  %v2922_v4 = vpop.xlane.xlu1 %651 }
 0x17f   : > { %4035 = vst [vmem:[#allocation65_spill] sm:$0xff] %v2920_v24  ;;  %v2925_v42 = vpop.xlane.xlu0 %648 }
 0x180   : > { %4036 = vst [vmem:[#allocation66_spill] sm:$0xff] %v2922_v4  ;;  %v258_v4 = vld [vmem:[%s2466_s22 + $0x450] sm:$0xff] }
 0x181   : > { %4037 = vst [vmem:[#allocation67_spill] sm:$0xff] %v2925_v42  ;;  %v791_v2 = vsel %vm376_vm0, %v258_v4, 0.0 }
 0x183   : > { %789 = vadd.xlane.f32.xlu2 %v788_v25  ;;  %786 = vadd.xlane.f32.xlu1 %v785_v26  ;;  %v263_v25 = vld [vmem:[%s2466_s22 + $0x478] sm:$0xff]  ;;  %v262_v26 = vld [vmem:[%s2466_s22 + $0x470] sm:$0xff] }
 0x184   : > { %783 = vadd.xlane.f32.xlu0 %v782_v45  ;;  %v803_v52 = vsel %vm376_vm0, %v262_v26, 0.0 }
 0x186   : > { %v2932_v44 = vpop.xlane.xlu2 %663  ;;  %v2934_v24 = vpop.xlane.xlu1 %660 }
 0x187   : > { %4038 = vst [vmem:[#allocation68_spill] sm:$0xff] %v2932_v44  ;;  %v2937_v42 = vpop.xlane.xlu0 %657 }
 0x188   : > { %4039 = vst [vmem:[#allocation69_spill] sm:$0xff] %v2934_v24  ;;  %v1657_v24 = vlaneseq }
 0x189   : > { %4040 = vst [vmem:[#allocation70_spill] sm:$0xff] %v2937_v42  ;;  %v806_v42 = vsel %vm376_vm0, %v263_v25, 0.0  ;;  %v264_v25 = vld [vmem:[%s2466_s22 + $0x480] sm:$0xff] }
 0x18a   : > { %v2948_v4 = vand.u32 127, %v1657_v24 }
 0x18b   : > { %798 = vadd.xlane.f32.xlu2 %v797_v7  ;;  %795 = vadd.xlane.f32.xlu1 %v794_v15 }
 0x18c   : > { %792 = vadd.xlane.f32.xlu0 %v791_v2  ;;  %v2951_v2 = vadd.s32 4294967288, %v2948_v4 }
 0x18e   : > { %v673_v45 = vpop.xlane.xlu2 %672  ;;  %v670_v44 = vpop.xlane.xlu1 %669 }
 0x18f   : > { %v667_v63 = vpop.xlane.xlu0 %666  ;;  %v1242_v7 = vmul.f32 0.015625, %v670_v44  ;;  %v1243_v30 = vmul.f32 0.015625, %v673_v45  ;;  %v2959_v44 = vadd.s32 4294967280, %v2948_v4  ;;  %v2964_v45 = vadd.s32 4294967272, %v2948_v4 }
 0x190   : > { %v1241_v15 = vmul.f32 0.015625, %v667_v63  ;;  %v815_v63 = vsel %vm376_vm0, %v266_v39, 0.0  ;;  %v2971_v39 = vadd.s32 4294967264, %v2948_v4 }
 0x191   : > { %v1876_v26 = vperm.slane %v1242_v7, %v2951_v2  ;;  %v1878_v7 = vperm.slane %v1243_v30, %v2959_v44 }
 0x192   : > { %v1875_v11 = vperm.slane %v1241_v15, %v2948_v4 }
 0x193   : > { %807 = vadd.xlane.f32.xlu2 %v806_v42  ;;  %804 = vadd.xlane.f32.xlu1 %v803_v52  ;;  %v812_v52 = vsel %vm376_vm0, %v265_v34, 0.0 }
 0x194   : > { %801 = vadd.xlane.f32.xlu0 %v800_v61  ;;  %v809_v61 = vsel %vm376_vm0, %v264_v25, 0.0  ;;  %v1877_v48 = vsel %vm1662_vm1, %v1876_v26, %v1875_v11  ;;  %v267_v26 = vld [vmem:[%s2466_s22 + $0x498] sm:$0xff]  ;;  %v2979_v11 = vadd.s32 4294967256, %v2948_v4 }
 0x195   : > { %v818_v14 = vsel %vm376_vm0, %v267_v26, 0.0  ;;  %v271_v26 = vld [vmem:[%s2466_s22 + $0x4b8] sm:$0xff] }
 0x196   : > { %v682_v51 = vpop.xlane.xlu2 %681  ;;  %v679_v27 = vpop.xlane.xlu1 %678 }
 0x197   : > { %v676_v24 = vpop.xlane.xlu0 %675  ;;  %v1245_v15 = vmul.f32 0.015625, %v679_v27  ;;  %v1246_v34 = vmul.f32 0.015625, %v682_v51  ;;  %v1879_v27 = vsel %vm3969_vm2, %v1878_v7, %v1877_v48 }
 0x198   : > { %v1244_v42 = vmul.f32 0.015625, %v676_v24 }
 0x199   : > { %v1882_v25 = vperm.slane %v1245_v15, %v2971_v39  ;;  %v821_v15 = vsel %vm376_vm0, %v268_v57, 0.0  ;;  %v1884_v48 = vperm.slane %v1246_v34, %v2979_v11  ;;  %v272_v57 = vld [vmem:[%s2466_s22 + $0x4c0] sm:$0xff] }
 0x19a   : > { %v1880_v24 = vperm.slane %v1244_v42, %v2964_v45 }
 0x19b   : > { %816 = vadd.xlane.f32.xlu2 %v815_v63  ;;  %813 = vadd.xlane.f32.xlu1 %v812_v52  ;;  %v2983_v52 = vadd.s32 4294967248, %v2948_v4 }
 0x19c   : > { %810 = vadd.xlane.f32.xlu0 %v809_v61  ;;  %v1881_v42 = vsel %vm1670_vm3, %v1880_v24, %v1879_v27  ;;  %v824_v61 = vsel %vm376_vm0, %v269_v43, 0.0  ;;  %v2992_v27 = vadd.s32 4294967240, %v2948_v4 }
 0x19d   : > { %v1883_v33 = vsel %vm3971_vm4, %v1882_v25, %v1881_v42  ;;  %v2999_v25 = vadd.s32 4294967232, %v2948_v4 }
 0x19e   : > { %v691_v30 = vpop.xlane.xlu2 %690  ;;  %v688_v13 = vpop.xlane.xlu1 %687 }
 0x19f   : > { %v685_v63 = vpop.xlane.xlu0 %684  ;;  %v1248_v7 = vmul.f32 0.015625, %v688_v13  ;;  %v1249_v43 = vmul.f32 0.015625, %v691_v30  ;;  %v1885_v13 = vsel %vm3970_vm5, %v1884_v48, %v1883_v33  ;;  %v833_v30 = vsel %vm376_vm0, %v272_v57, 0.0 }
 0x1a0   : > { %v1247_v51 = vmul.f32 0.015625, %v685_v63  ;;  %v830_v48 = vsel %vm376_vm0, %v271_v26, 0.0  ;;  %v275_v26 = vld [vmem:[%s2466_s22 + $0x4d8] sm:$0xff] }
 0x1a1   : > { %v1888_v34 = vperm.slane %v1248_v7, %v2992_v27  ;;  %v842_v53 = vsel %vm376_vm0, %v275_v26, 0.0 }
 0x1a2   : > { %v1886_v24 = vperm.slane %v1247_v51, %v2983_v52 }
 0x1a3   : > { %825 = vadd.xlane.f32.xlu2 %v824_v61  ;;  %822 = vadd.xlane.f32.xlu1 %v821_v15  ;;  %v3004_v61 = vadd.s32 4294967224, %v2948_v4  ;;  %v1890_v15 = vperm.slane %v1249_v43, %v2999_v25 }
 0x1a4   : > { %819 = vadd.xlane.f32.xlu0 %v818_v14  ;;  %v1887_v42 = vsel %vm1682_vm6, %v1886_v24, %v1885_v13  ;;  %v827_v24 = vsel %vm376_vm0, %v270_v8, 0.0  ;;  %v3012_v13 = vadd.s32 4294967216, %v2948_v4 }
 0x1a5   : > { %v1889_v16 = vsel %vm1686_vm7, %v1888_v34, %v1887_v42  ;;  %v3018_v34 = vadd.s32 4294967208, %v2948_v4  ;;  %v274_v42 = vld [vmem:[%s2466_s22 + $0x4d0] sm:$0xff] }
 0x1a6   : > { %v700_v63 = vpop.xlane.xlu2 %699  ;;  %v697_v51 = vpop.xlane.xlu1 %696  ;;  %v1891_v57 = vsel %vm3972_vm8, %v1890_v15, %v1889_v16  ;;  %v839_v22 = vsel %vm376_vm0, %v274_v42, 0.0  ;;  %v1148_v42 = vmul.f32 0.015625, %v2574_v38 }
 0x1a7   : > { %v694_v14 = vpop.xlane.xlu0 %693  ;;  %v1251_v7 = vmul.f32 0.015625, %v697_v51  ;;  %v1252_v54 = vmul.f32 0.015625, %v700_v63  ;;  %v1145_v51 = vmul.f32 0.015625, %v2565_v31  ;;  %v1146_v63 = vmul.f32 0.015625, %v2577_v40 }
 0x1a8   : > { %v1250_v33 = vmul.f32 0.015625, %v694_v14  ;;  %v3026_v14 = vadd.s32 4294967184, %v2948_v4 }
 0x1a9   : > { %v1894_v43 = vperm.slane %v1251_v7, %v3012_v13  ;;  %v273_v7 = vld [vmem:[%s2466_s22 + $0x4c8] sm:$0xff]  ;;  %v1661_v62 = vperm.slane %v1146_v63, %v2951_v2  ;;  %v1659_v26 = vperm.slane %v1145_v51, %v2948_v4  ;;  %v276_v51 = vld [vmem:[%s2466_s22 + $0x4e0] sm:$0xff] }
 0x1aa   : > { %v1892_v32 = vperm.slane %v1250_v33, %v3004_v61  ;;  %v3033_v33 = vadd.s32 4294967192, %v2948_v4  ;;  %v836_v60 = vsel %vm376_vm0, %v273_v7, 0.0  ;;  %v278_v7 = vld [vmem:[%s2466_s22 + $0x4f0] sm:$0xff] }
 0x1ab   : > { %834 = vadd.xlane.f32.xlu2 %v833_v30  ;;  %831 = vadd.xlane.f32.xlu1 %v830_v48  ;;  %v3029_v30 = vadd.s32 4294967200, %v2948_v4 }
 0x1ac   : > { %828 = vadd.xlane.f32.xlu0 %v827_v24  ;;  %v1893_v8 = vsel %vm3965_vm9, %v1892_v32, %v1891_v57  ;;  %v1896_v32 = vperm.slane %v1252_v54, %v3018_v34 }
 0x1ad   : > { %v1895_v31 = vsel %vm3968_vm10, %v1894_v43, %v1893_v8  ;;  %v1147_v43 = vmul.f32 0.015625, %v2562_v29  ;;  %v1149_v29 = vmul.f32 0.015625, %v2560_v28  ;;  %v851_v28 = vsel %vm376_vm0, %v278_v7, 0.0 }
 0x1ae   : > { %v709_v16 = vpop.xlane.xlu2 %708  ;;  %v706_v15 = vpop.xlane.xlu1 %705  ;;  %v1897_v8 = vsel %vm3966_vm11, %v1896_v32, %v1895_v31  ;;  %v1663_v32 = vsel %vm1662_vm1, %v1661_v62, %v1659_v26  ;;  %v845_v26 = vsel %vm376_vm0, %v276_v51, 0.0 }
 0x1af   : > { %v1255_v48 = vmul.f32 0.015625, %v709_v16  ;;  %v1254_v24 = vmul.f32 0.015625, %v706_v15  ;;  %v703_v57 = vpop.xlane.xlu0 %702  ;;  %v1665_v38 = vperm.slane %v1147_v43, %v2959_v44 }
 0x1b0   : > { %v1253_v40 = vmul.f32 0.015625, %v703_v57  ;;  %v3058_v57 = vadd.s32 4294967176, %v2948_v4 }
 0x1b1   : > { %v1900_v59 = vperm.slane %v1254_v24, %v3033_v33  ;;  %v1902_v54 = vperm.slane %v1255_v48, %v3026_v14  ;;  %v277_v48 = vld [vmem:[%s2466_s22 + $0x4e8] sm:$0xff] }
 0x1b2   : > { %v1898_v16 = vperm.slane %v1253_v40, %v3029_v30  ;;  %v848_v62 = vsel %vm376_vm0, %v277_v48, 0.0 }
 0x1b3   : > { %843 = vadd.xlane.f32.xlu2 %v842_v53  ;;  %840 = vadd.xlane.f32.xlu1 %v839_v22 }
 0x1b4   : > { %v1899_v63 = vsel %vm3967_vm12, %v1898_v16, %v1897_v8  ;;  %837 = vadd.xlane.f32.xlu0 %v836_v60  ;;  %v1667_v8 = vsel %vm3969_vm2, %v1665_v38, %v1663_v32  ;;  %v1152_v38 = vmul.f32 0.015625, %v2586_v47 }
 0x1b5   : > { %v1901_v15 = vsel %vm1710_vm13, %v1900_v59, %v1899_v63  ;;  %v1669_v59 = vperm.slane %v1148_v42, %v2964_v45  ;;  %v1150_v63 = vmul.f32 0.015625, %v2572_v37  ;;  %v1151_v42 = vmul.f32 0.015625, %v2589_v49  ;;  %v280_v37 = vld [vmem:[%s2466_s22 + $0x500] sm:$0xff] }
 0x1b6   : > { %v718_v53 = vpop.xlane.xlu2 %717  ;;  %v715_v24 = vpop.xlane.xlu1 %714  ;;  %v1903_v22 = vsel %vm1714_vm14, %v1902_v54, %v1901_v15 }
 0x1b7   : > { %v1258_v60 = vmul.f32 0.015625, %v718_v53  ;;  %v1257_v31 = vmul.f32 0.015625, %v715_v24  ;;  %v712_v40 = vpop.xlane.xlu0 %711  ;;  %v1671_v48 = vsel %vm1670_vm3, %v1669_v59, %v1667_v8  ;;  %v1673_v53 = vperm.slane %v1149_v29, %v2971_v39  ;;  %v281_v24 = vld [vmem:[%s2466_s22 + $0x508] sm:$0xff] }
 0x1b8   : > { %v1256_v16 = vmul.f32 0.015625, %v712_v40  ;;  %v1677_v51 = vperm.slane %v1150_v63, %v2979_v11  ;;  %v860_v8 = vsel %vm376_vm0, %v281_v24, 0.0  ;;  %v857_v29 = vsel %vm376_vm0, %v280_v37, 0.0 }
 0x1b9   : > { %v1907_v54 = vperm.slane %v1258_v60, %v2951_v2  ;;  %v1906_v43 = vperm.slane %v1257_v31, %v2948_v4  ;;  %v279_v31 = vld [vmem:[%s2466_s22 + $0x4f8] sm:$0xff]  ;;  %v1675_v40 = vsel %vm3971_vm4, %v1673_v53, %v1671_v48  ;;  %v1154_v53 = vmul.f32 0.015625, %v2601_v58  ;;  %v282_v58 = vld [vmem:[%s2466_s22 + $0x510] sm:$0xff] }
 0x1ba   : > { %v1904_v15 = vperm.slane %v1256_v16, %v3058_v57  ;;  %v1681_v16 = vperm.slane %v1151_v42, %v2983_v52  ;;  %v1679_v63 = vsel %vm3970_vm5, %v1677_v51, %v1675_v40  ;;  %v283_v51 = vld [vmem:[%s2466_s22 + $0x518] sm:$0xff] }
 0x1bb   : > { %v1908_v7 = vsel %vm1662_vm1, %v1907_v54, %v1906_v43  ;;  %852 = vadd.xlane.f32.xlu2 %v851_v28  ;;  %849 = vadd.xlane.f32.xlu1 %v848_v62  ;;  %v1153_v54 = vmul.f32 0.015625, %v2584_v46  ;;  %v854_v43 = vsel %vm376_vm0, %v279_v31, 0.0 }
 0x1bc   : > { %v3073_v32 = vsel %vm1718_vm15, %v1904_v15, %v1903_v22  ;;  %846 = vadd.xlane.f32.xlu0 %v845_v26  ;;  %v1685_v26 = vperm.slane %v1152_v38, %v2992_v27  ;;  %v1683_v48 = vsel %vm1682_vm6, %v1681_v16, %v1679_v63  ;;  %v284_v38 = vld [vmem:[%s2466_s22 + $0x520] sm:$0xff] }
 0x1bd   : > { %v1689_v24 = vperm.slane %v1153_v54, %v2999_v25 }
 0x1be   : > { %v727_v49 = vpop.xlane.xlu2 %726  ;;  %v724_v60 = vpop.xlane.xlu1 %723 }
 0x1bf   : > { %v1261_v59 = vmul.f32 0.015625, %v727_v49  ;;  %v1260_v28 = vmul.f32 0.015625, %v724_v60  ;;  %v721_v22 = vpop.xlane.xlu0 %720  ;;  %v1687_v49 = vsel %vm1686_vm7, %v1685_v26, %v1683_v48  ;;  %v1155_v60 = vmul.f32 0.015625, %v2598_v56 }
 0x1c0   : > { %v1259_v62 = vmul.f32 0.015625, %v721_v22  ;;  %v1691_v54 = vsel %vm3972_vm8, %v1689_v24, %v1687_v49  ;;  %v287_v24 = vld [vmem:[%s2466_s22 + $0x538] sm:$0xff] }
 0x1c1   : > { %v1911_v47 = vperm.slane %v1260_v28, %v2964_v45  ;;  %v1913_v15 = vperm.slane %v1261_v59, %v2971_v39  ;;  %v1693_v59 = vperm.slane %v1154_v53, %v3004_v61  ;;  %v1697_v26 = vperm.slane %v1155_v60, %v3012_v13 }
 0x1c2   : > { %v1909_v42 = vperm.slane %v1259_v62, %v2959_v44  ;;  %v1157_v53 = vmul.f32 0.015625, %v2613_v3  ;;  %v1178_v3 = vmul.f32 0.015625, %v2697_v23  ;;  %v1161_v23 = vmul.f32 0.015625, %v2622_v10 }
 0x1c3   : > { %861 = vadd.xlane.f32.xlu2 %v860_v8  ;;  %858 = vadd.xlane.f32.xlu1 %v857_v29  ;;  %v869_v8 = vsel %vm376_vm0, %v284_v38, 0.0  ;;  %v866_v29 = vsel %vm376_vm0, %v283_v51, 0.0  ;;  %v3122_v51 = vmul.f32 0.015625, %v2608_v0 }
 0x1c4   : > { %v1910_v46 = vsel %vm3969_vm2, %v1909_v42, %v1908_v7  ;;  %855 = vadd.xlane.f32.xlu0 %v854_v43  ;;  %v1156_v43 = vmul.f32 0.015625, %v2596_v55  ;;  %v1695_v42 = vsel %vm3965_vm9, %v1693_v59, %v1691_v54  ;;  %v286_v55 = vld [vmem:[%s2466_s22 + $0x530] sm:$0xff] }
 0x1c5   : > { %v1912_v37 = vsel %vm1670_vm3, %v1911_v47, %v1910_v46  ;;  %v863_v47 = vsel %vm376_vm0, %v282_v58, 0.0  ;;  %v1699_v38 = vsel %vm3968_vm10, %v1697_v26, %v1695_v42  ;;  %v875_v0 = vsel %vm376_vm0, %v286_v55, 0.0 }
 0x1c6   : > { %v736_v31 = vpop.xlane.xlu2 %735  ;;  %v733_v40 = vpop.xlane.xlu1 %732  ;;  %v1914_v16 = vsel %vm3971_vm4, %v1913_v15, %v1912_v37  ;;  %v1701_v37 = vperm.slane %v1156_v43, %v3018_v34  ;;  %v1752_v26 = vperm.slane %v1178_v3, %v2951_v2  ;;  %v1720_v55 = vperm.slane %v1161_v23, %v2948_v4 }
 0x1c7   : > { %v1264_v28 = vmul.f32 0.015625, %v736_v31  ;;  %v1263_v7 = vmul.f32 0.015625, %v733_v40  ;;  %v730_v22 = vpop.xlane.xlu0 %729  ;;  %v285_v40 = vld [vmem:[%s2466_s22 + $0x528] sm:$0xff] }
 0x1c8   : > { %v1262_v62 = vmul.f32 0.015625, %v730_v22  ;;  %v1703_v10 = vsel %vm3966_vm11, %v1701_v37, %v1699_v38 }
 0x1c9   : > { %v1917_v56 = vperm.slane %v1263_v7, %v2983_v52  ;;  %v1919_v63 = vperm.slane %v1264_v28, %v2992_v27  ;;  %v1158_v7 = vmul.f32 0.015625, %v2610_v1 }
 0x1ca   : > { %v1915_v15 = vperm.slane %v1262_v62, %v2979_v11  ;;  %v878_v62 = vsel %vm376_vm0, %v287_v24, 0.0  ;;  %v289_v24 = vld [vmem:[%s2466_s22 + $0x548] sm:$0xff] }
 0x1cb   : > { %870 = vadd.xlane.f32.xlu2 %v869_v8  ;;  %867 = vadd.xlane.f32.xlu1 %v866_v29  ;;  %v1705_v8 = vperm.slane %v1157_v53, %v3029_v30  ;;  %v1162_v29 = vmul.f32 0.015625, %v2620_v9  ;;  %v1713_v9 = vperm.slane %v3122_v51, %v3026_v14 }
 0x1cc   : > { %v1916_v48 = vsel %vm3970_vm5, %v1915_v15, %v1914_v16  ;;  %864 = vadd.xlane.f32.xlu0 %v863_v47  ;;  %v1177_v16 = vmul.f32 0.015625, %v2680_v5  ;;  %v872_v5 = vsel %vm376_vm0, %v285_v40, 0.0  ;;  %v288_v40 = vld [vmem:[%s2466_s22 + $0x540] sm:$0xff] }
 0x1cd   : > { %v1918_v46 = vsel %vm1682_vm6, %v1917_v56, %v1916_v48  ;;  %v1179_v56 = vmul.f32 0.015625, %v2694_v20  ;;  %v1707_v15 = vsel %vm3967_vm12, %v1705_v8, %v1703_v10  ;;  %v1721_v42 = vperm.slane %v1162_v29, %v2951_v2 }
 0x1ce   : > { %v745_v49 = vpop.xlane.xlu2 %744  ;;  %v742_v60 = vpop.xlane.xlu1 %741  ;;  %v1920_v31 = vsel %vm1686_vm7, %v1919_v63, %v1918_v46  ;;  %v1751_v43 = vperm.slane %v1177_v16, %v2948_v4  ;;  %v1709_v63 = vperm.slane %v1158_v7, %v3033_v33  ;;  %v1180_v48 = vmul.f32 0.015625, %v2692_v17  ;;  %v290_v46 = vld [vmem:[%s2466_s22 + $0x550] sm:$0xff] }
 0x1cf   : > { %v1267_v58 = vmul.f32 0.015625, %v745_v49  ;;  %v1266_v59 = vmul.f32 0.015625, %v742_v60  ;;  %v739_v28 = vpop.xlane.xlu0 %738  ;;  %v1754_v49 = vperm.slane %v1179_v56, %v2959_v44  ;;  %v1181_v60 = vmul.f32 0.015625, %v2709_v41 }
 0x1d0   : > { %v1265_v22 = vmul.f32 0.015625, %v739_v28  ;;  %v1163_v16 = vmul.f32 0.015625, %v2637_v21  ;;  %v1753_v3 = vsel %vm1662_vm1, %v1752_v26, %v1751_v43  ;;  %v3160_v28 = vmul.f32 0.015625, %v2634_v19 }
 0x1d1   : > { %v1923_v54 = vperm.slane %v1266_v59, %v3004_v61  ;;  %v1925_v1 = vperm.slane %v1267_v58, %v3012_v13  ;;  %v884_v41 = vsel %vm376_vm0, %v289_v24, 0.0  ;;  %v881_v21 = vsel %vm376_vm0, %v288_v40, 0.0 }
 0x1d2   : > { %v1921_v47 = vperm.slane %v1265_v22, %v2999_v25  ;;  %v887_v22 = vsel %vm376_vm0, %v290_v46, 0.0  ;;  %v1755_v29 = vsel %vm3969_vm2, %v1754_v49, %v1753_v3  ;;  %v1711_v23 = vsel %vm1710_vm13, %v1709_v63, %v1707_v15  ;;  %v293_v15 = vld [vmem:[%s2466_s22 + $0x568] sm:$0xff] }
 0x1d3   : > { %879 = vadd.xlane.f32.xlu2 %v878_v62  ;;  %876 = vadd.xlane.f32.xlu1 %v875_v0  ;;  %v1756_v62 = vperm.slane %v1180_v48, %v2964_v45  ;;  %v1182_v0 = vmul.f32 0.015625, %v2706_v36  ;;  %v3174_v56 = vmul.f32 0.015625, %v2625_v12  ;;  %v1723_v36 = vperm.slane %v1163_v16, %v2959_v44  ;;  %v292_v48 = vld [vmem:[%s2466_s22 + $0x560] sm:$0xff] }
 0x1d4   : > { %v1922_v20 = vsel %vm3972_vm8, %v1921_v47, %v1920_v31  ;;  %873 = vadd.xlane.f32.xlu0 %v872_v5  ;;  %v1722_v47 = vsel %vm1662_vm1, %v1721_v42, %v1720_v55  ;;  %v3180_v43 = vmul.f32 0.015625, %v2632_v18  ;;  %v1209_v26 = vmul.f32 0.015625, %v2814_v50 }
 0x1d5   : > { %v1924_v53 = vsel %vm3965_vm9, %v1923_v54, %v1922_v20  ;;  %v1758_v54 = vperm.slane %v1181_v60, %v2971_v39  ;;  %v1183_v12 = vmul.f32 0.015625, %v2704_v35  ;;  %v1760_v10 = vperm.slane %v1182_v0, %v2979_v11  ;;  %v291_v35 = vld [vmem:[%s2466_s22 + $0x558] sm:$0xff] }
 0x1d6   : > { %v754_v37 = vpop.xlane.xlu2 %753  ;;  %v751_v38 = vpop.xlane.xlu1 %750  ;;  %v1926_v31 = vsel %vm3968_vm10, %v1925_v1, %v1924_v53  ;;  %v1210_v1 = vmul.f32 0.015625, %v2812_v6  ;;  %v1757_v20 = vsel %vm1670_vm3, %v1756_v62, %v1755_v29  ;;  %v1725_v18 = vperm.slane %v3160_v28, %v2964_v45  ;;  %v4041_v53 = vld [vmem:[#allocation18_spill] sm:$0xff] }
 0x1d7   : > { %v1270_v17 = vmul.f32 0.015625, %v754_v37  ;;  %v1269_v58 = vmul.f32 0.015625, %v751_v38  ;;  %v748_v59 = vpop.xlane.xlu0 %747  ;;  %v1759_v42 = vsel %vm3971_vm4, %v1758_v54, %v1757_v20  ;;  %v1184_v50 = vmul.f32 0.015625, %v4041_v53  ;;  %v4042_v37 = vld [vmem:[#allocation43_spill] sm:$0xff] }
 0x1d8   : > { %v1268_v7 = vmul.f32 0.015625, %v748_v59  ;;  %v1724_v49 = vsel %vm3969_vm2, %v1723_v36, %v1722_v47  ;;  %v1814_v60 = vperm.slane %v1210_v1, %v2951_v2  ;;  %v1211_v38 = vmul.f32 0.015625, %v4042_v37 }
 0x1d9   : > { %v1929_v8 = vperm.slane %v1269_v58, %v3029_v30  ;;  %v1931_v19 = vperm.slane %v1270_v17, %v3033_v33  ;;  %v1813_v16 = vperm.slane %v1209_v26, %v2948_v4  ;;  %v896_v17 = vsel %vm376_vm0, %v293_v15, 0.0 }
 0x1da   : > { %v1927_v5 = vperm.slane %v1268_v7, %v3018_v34  ;;  %v893_v58 = vsel %vm376_vm0, %v292_v48, 0.0  ;;  %v1762_v59 = vperm.slane %v1183_v12, %v2983_v52  ;;  %v1761_v28 = vsel %vm3970_vm5, %v1760_v10, %v1759_v42  ;;  %v296_v12 = vld [vmem:[%s2466_s22 + $0x580] sm:$0xff]  ;;  %v295_v10 = vld [vmem:[%s2466_s22 + $0x578] sm:$0xff] }
 0x1db   : > { %888 = vadd.xlane.f32.xlu2 %v887_v22  ;;  %885 = vadd.xlane.f32.xlu1 %v884_v41  ;;  %v890_v22 = vsel %vm376_vm0, %v291_v35, 0.0  ;;  %v4043_v41 = vld [vmem:[#allocation17_spill] sm:$0xff]  ;;  %v1764_v0 = vperm.slane %v1184_v50, %v2992_v27  ;;  %v1715_v54 = vsel %vm1714_vm14, %v1713_v9, %v1711_v23  ;;  %v1727_v36 = vperm.slane %v3180_v43, %v2971_v39  ;;  %v4045_v9 = vld [vmem:[#allocation16_spill] sm:$0xff] }
 0x1dc   : > { %v1928_v63 = vsel %vm3966_vm11, %v1927_v5, %v1926_v31  ;;  %882 = vadd.xlane.f32.xlu0 %v881_v21  ;;  %v1185_v62 = vmul.f32 0.015625, %v4043_v41  ;;  %v1816_v5 = vperm.slane %v1211_v38, %v2959_v44  ;;  %v1815_v1 = vsel %vm1662_vm1, %v1814_v60, %v1813_v16  ;;  %v4048_v16 = vld [vmem:[#allocation21_spill] sm:$0xff] }
 0x1dd   : > { %v1930_v6 = vsel %vm3967_vm12, %v1929_v8, %v1928_v63  ;;  %v4044_v8 = vld [vmem:[#allocation42_spill] sm:$0xff]  ;;  %v1726_v51 = vsel %vm1670_vm3, %v1725_v18, %v1724_v49  ;;  %v1186_v23 = vmul.f32 0.015625, %v4045_v9  ;;  %v294_v18 = vld [vmem:[%s2466_s22 + $0x570] sm:$0xff]  ;;  %v905_v38 = vsel %vm376_vm0, %v296_v12, 0.0 }
 0x1de   : > { %v763_v46 = vpop.xlane.xlu2 %762  ;;  %v760_v24 = vpop.xlane.xlu1 %759  ;;  %v1932_v55 = vsel %vm1710_vm13, %v1931_v19, %v1930_v6  ;;  %v1212_v21 = vmul.f32 0.015625, %v4044_v8  ;;  %v1717_v19 = vperm.slane %v3174_v56, %v3058_v57  ;;  %v1763_v56 = vsel %vm1682_vm6, %v1762_v59, %v1761_v28  ;;  %v4046_v6 = vld [vmem:[#allocation41_spill] sm:$0xff] }
 0x1df   : > { %v1272_v31 = vmul.f32 0.015625, %v760_v24  ;;  %v757_v40 = vpop.xlane.xlu0 %756  ;;  %v1273_v47 = vmul.f32 0.015625, %v763_v46  ;;  %v1766_v43 = vperm.slane %v1185_v62, %v2999_v25  ;;  %v1765_v20 = vsel %vm1686_vm7, %v1764_v0, %v1763_v56  ;;  %v4047_v46 = vld [vmem:[#allocation46_spill] sm:$0xff]  ;;  %v4049_v0 = vld [vmem:[#allocation45_spill] sm:$0xff]  ;;  %v299_v56 = vld [vmem:[%s2466_s22 + $0x598] sm:$0xff] }
 0x1e0   : > { %v1271_v3 = vmul.f32 0.015625, %v757_v40  ;;  %v1213_v15 = vmul.f32 0.015625, %v4046_v6  ;;  %v1818_v48 = vperm.slane %v1212_v21, %v2964_v45  ;;  %v1817_v50 = vsel %vm3969_vm2, %v1816_v5, %v1815_v1 }
 0x1e1   : > { %v1935_v7 = vperm.slane %v1272_v31, %v3058_v57  ;;  %v1214_v24 = vmul.f32 0.015625, %v4047_v46  ;;  %v1937_v60 = vperm.slane %v1273_v47, %v2948_v4  ;;  %v902_v31 = vsel %vm376_vm0, %v295_v10, 0.0  ;;  %v4053_v10 = vld [vmem:[#allocation44_spill] sm:$0xff] }
 0x1e2   : > { %v1933_v29 = vperm.slane %v1271_v3, %v3026_v14  ;;  %v1768_v40 = vperm.slane %v1186_v23, %v3004_v61  ;;  %v1187_v3 = vmul.f32 0.015625, %v4048_v16  ;;  %v1767_v59 = vsel %vm3972_vm8, %v1766_v43, %v1765_v20 }
 0x1e3   : > { %897 = vadd.xlane.f32.xlu2 %v896_v17  ;;  %894 = vadd.xlane.f32.xlu1 %v893_v58  ;;  %v899_v58 = vsel %vm376_vm0, %v294_v18, 0.0  ;;  %v1820_v28 = vperm.slane %v1213_v15, %v2971_v39  ;;  %v3248_v41 = vsel %vm1718_vm15, %v1717_v19, %v1715_v54  ;;  %v1819_v62 = vsel %vm1670_vm3, %v1818_v48, %v1817_v50  ;;  %v4051_v54 = vld [vmem:[#allocation20_spill] sm:$0xff]  ;;  %v4054_v18 = vld [vmem:[#allocation49_spill] sm:$0xff] }
 0x1e4   : > { %v1934_v26 = vsel %vm1714_vm14, %v1933_v29, %v1932_v55  ;;  %891 = vadd.xlane.f32.xlu0 %v890_v22  ;;  %v1215_v8 = vmul.f32 0.015625, %v4049_v0  ;;  %v3253_v21 = vsel %vm3971_vm4, %v1727_v36, %v1726_v51  ;;  %v4050_v29 = vld [vmem:[#allocation7_spill] sm:$0xff]  ;;  %v1822_v1 = vperm.slane %v1214_v24, %v2979_v11  ;;  %v4057_v0 = vld [vmem:[#allocation48_spill] sm:$0xff] }
 0x1e5   : > { %v3225_v63 = vsel %vm1718_vm15, %v1935_v7, %v1934_v26  ;;  %v3256_v5 = vmul.f32 0.015625, %v4050_v29  ;;  %v1188_v19 = vmul.f32 0.015625, %v4051_v54  ;;  %v1769_v26 = vsel %vm3965_vm9, %v1768_v40, %v1767_v59  ;;  %v298_v36 = vld [vmem:[%s2466_s22 + $0x590] sm:$0xff] }
 0x1e6   : > { %v772_v42 = vpop.xlane.xlu2 %771  ;;  %v769_v53 = vpop.xlane.xlu1 %768  ;;  %v1770_v9 = vperm.slane %v1187_v3, %v3012_v13  ;;  %v4052_v51 = vld [vmem:[#allocation19_spill] sm:$0xff]  ;;  %v1216_v43 = vmul.f32 0.015625, %v4053_v10  ;;  %v1821_v20 = vsel %vm3971_vm4, %v1820_v28, %v1819_v62  ;;  %v1217_v50 = vmul.f32 0.015625, %v4054_v18  ;;  %v4055_v3 = vld [vmem:[#allocation24_spill] sm:$0xff]  ;;  %v300_v18 = vld [vmem:[%s2466_s22 + $0x5a0] sm:$0xff] }
 0x1e7   : > { %v1276_v55 = vmul.f32 0.015625, %v772_v42  ;;  %v1275_v35 = vmul.f32 0.015625, %v769_v53  ;;  %v766_v49 = vpop.xlane.xlu0 %765  ;;  %v1189_v12 = vmul.f32 0.015625, %v4052_v51  ;;  %v297_v42 = vld [vmem:[%s2466_s22 + $0x588] sm:$0xff]  ;;  %v1824_v53 = vperm.slane %v1215_v8, %v2983_v52 }
 0x1e8   : > { %v1274_v37 = vmul.f32 0.015625, %v766_v49  ;;  %v908_v16 = vsel %vm376_vm0, %v297_v42, 0.0  ;;  %v1218_v8 = vmul.f32 0.015625, %v4057_v0  ;;  %v1828_v29 = vperm.slane %v1217_v50, %v2999_v25 }
 0x1e9   : > { %v1940_v17 = vperm.slane %v1275_v35, %v2959_v44  ;;  %v1942_v7 = vperm.slane %v1276_v55, %v2964_v45  ;;  %v1823_v35 = vsel %vm3970_vm5, %v1822_v1, %v1821_v20  ;;  %v4058_v1 = vld [vmem:[#allocation6_spill] sm:$0xff]  ;;  %v1729_v54 = vperm.slane %v3256_v5, %v2979_v11  ;;  %v4061_v5 = vld [vmem:[#allocation47_spill] sm:$0xff] }
 0x1ea   : > { %v1938_v22 = vperm.slane %v1274_v37, %v2951_v2  ;;  %v911_v37 = vsel %vm376_vm0, %v298_v36, 0.0  ;;  %v1825_v62 = vsel %vm1682_vm6, %v1824_v53, %v1823_v35  ;;  %v4060_v36 = vld [vmem:[#allocation23_spill] sm:$0xff]  ;;  %v301_v20 = vld [vmem:[%s2466_s22 + $0x5a8] sm:$0xff]  ;;  %v1830_v50 = vperm.slane %v1218_v8, %v3004_v61 }
 0x1eb   : > { %906 = vadd.xlane.f32.xlu2 %v905_v38  ;;  %903 = vadd.xlane.f32.xlu1 %v902_v31  ;;  %v1772_v38 = vperm.slane %v1188_v19, %v3018_v34  ;;  %v1771_v31 = vsel %vm3968_vm10, %v1770_v9, %v1769_v26  ;;  %v1774_v19 = vperm.slane %v1189_v12, %v3029_v30  ;;  %v1191_v51 = vmul.f32 0.015625, %v4060_v36  ;;  %v4064_v36 = vld [vmem:[#allocation26_spill] sm:$0xff] }
 0x1ec   : > { %v1939_v47 = vsel %vm1662_vm1, %v1938_v22, %v1937_v60  ;;  %900 = vadd.xlane.f32.xlu0 %v899_v58  ;;  %v914_v60 = vsel %vm376_vm0, %v299_v56, 0.0  ;;  %v1826_v58 = vperm.slane %v1216_v43, %v2992_v27  ;;  %v302_v43 = vld [vmem:[%s2466_s22 + $0x5b0] sm:$0xff] }
 0x1ed   : > { %v1941_v23 = vsel %vm3969_vm2, %v1940_v17, %v1939_v47  ;;  %v1190_v17 = vmul.f32 0.015625, %v4055_v3  ;;  %v3291_v47 = vmul.f32 0.015625, %v4058_v1  ;;  %v1773_v9 = vsel %vm3966_vm11, %v1772_v38, %v1771_v31 }
 0x1ee   : > { %v781_v6 = vpop.xlane.xlu2 %780  ;;  %v778_v15 = vpop.xlane.xlu1 %777  ;;  %v1943_v48 = vsel %vm1670_vm3, %v1942_v7, %v1941_v23  ;;  %v4056_v7 = vld [vmem:[#allocation5_spill] sm:$0xff]  ;;  %v4059_v23 = vld [vmem:[#allocation22_spill] sm:$0xff]  ;;  %v1827_v12 = vsel %vm1686_vm7, %v1826_v58, %v1825_v62  ;;  %v923_v38 = vsel %vm376_vm0, %v302_v43, 0.0  ;;  %v920_v31 = vsel %vm376_vm0, %v301_v20, 0.0 }
 0x1ef   : > { %v1279_v46 = vmul.f32 0.015625, %v781_v6  ;;  %v1278_v24 = vmul.f32 0.015625, %v778_v15  ;;  %v775_v55 = vpop.xlane.xlu0 %774  ;;  %v3285_v22 = vmul.f32 0.015625, %v4056_v7  ;;  %v3299_v56 = vmul.f32 0.015625, %v4059_v23 }
 0x1f0   : > { %v1277_v49 = vmul.f32 0.015625, %v775_v55  ;;  %v1776_v6 = vperm.slane %v1190_v17, %v3033_v33  ;;  %v1219_v15 = vmul.f32 0.015625, %v4061_v5  ;;  %v917_v17 = vsel %vm376_vm0, %v300_v18, 0.0  ;;  %v304_v5 = vld [vmem:[%s2466_s22 + $0x5c0] sm:$0xff]  ;;  %v303_v18 = vld [vmem:[%s2466_s22 + $0x5b8] sm:$0xff] }
 0x1f1   : > { %v1946_v40 = vperm.slane %v1278_v24, %v2979_v11  ;;  %v1948_v59 = vperm.slane %v1279_v46, %v2983_v52  ;;  %v1829_v46 = vsel %vm3972_vm8, %v1828_v29, %v1827_v12  ;;  %v1733_v62 = vperm.slane %v3285_v22, %v2992_v27  ;;  %v4063_v29 = vld [vmem:[#allocation51_spill] sm:$0xff] }
 0x1f2   : > { %v1944_v28 = vperm.slane %v1277_v49, %v2971_v39  ;;  %v4062_v49 = vld [vmem:[#allocation52_spill] sm:$0xff]  ;;  %v1731_v0 = vperm.slane %v3291_v47, %v2983_v52  ;;  %v1831_v8 = vsel %vm3965_vm9, %v1830_v50, %v1829_v46  ;;  %v1221_v1 = vmul.f32 0.015625, %v4063_v29  ;;  %v4068_v46 = vld [vmem:[#allocation55_spill] sm:$0xff] }
 0x1f3   : > { %915 = vadd.xlane.f32.xlu2 %v914_v60  ;;  %912 = vadd.xlane.f32.xlu1 %v911_v37  ;;  %v1220_v60 = vmul.f32 0.015625, %v4062_v49 }
 0x1f4   : > { %v1945_v26 = vsel %vm3971_vm4, %v1944_v28, %v1943_v48  ;;  %909 = vadd.xlane.f32.xlu0 %v908_v16  ;;  %v1775_v16 = vsel %vm3967_vm12, %v1774_v19, %v1773_v9  ;;  %v1730_v19 = vsel %vm3970_vm5, %v1729_v54, %v3253_v21  ;;  %v4066_v21 = vld [vmem:[#allocation25_spill] sm:$0xff]  ;;  %v1836_v50 = vperm.slane %v1221_v1, %v3029_v30  ;;  %v4070_v1 = vld [vmem:[#allocation8_spill] sm:$0xff] }
 0x1f5   : > { %v1947_v10 = vsel %vm3970_vm5, %v1946_v40, %v1945_v26  ;;  %v1778_v40 = vperm.slane %v1191_v51, %v3026_v14  ;;  %v1777_v58 = vsel %vm1710_vm13, %v1776_v6, %v1775_v16  ;;  %v1780_v26 = vperm.slane %v3299_v56, %v3058_v57  ;;  %v305_v6 = vld [vmem:[%s2466_s22 + $0x5c8] sm:$0xff] }
 0x1f6   : > { %v790_v42 = vpop.xlane.xlu2 %789  ;;  %v787_v48 = vpop.xlane.xlu1 %786  ;;  %v1949_v53 = vsel %vm1682_vm6, %v1948_v59, %v1947_v10  ;;  %v1832_v59 = vperm.slane %v1219_v15, %v3012_v13  ;;  %v1834_v9 = vperm.slane %v1220_v60, %v3018_v34  ;;  %v1194_v51 = vmul.f32 0.015625, %v4064_v36  ;;  %v4065_v10 = vld [vmem:[#allocation27_spill] sm:$0xff]  ;;  %v4067_v56 = vld [vmem:[#allocation50_spill] sm:$0xff] }
 0x1f7   : > { %v1282_v24 = vmul.f32 0.015625, %v790_v42  ;;  %v1281_v55 = vmul.f32 0.015625, %v787_v48  ;;  %v784_v35 = vpop.xlane.xlu0 %783  ;;  %v1779_v47 = vsel %vm1714_vm14, %v1778_v40, %v1777_v58  ;;  %v1193_v43 = vmul.f32 0.015625, %v4065_v10 }
 0x1f8   : > { %v1280_v37 = vmul.f32 0.015625, %v784_v35  ;;  %v3342_v54 = vmul.f32 0.015625, %v4066_v21  ;;  %v1222_v15 = vmul.f32 0.015625, %v4067_v56  ;;  %v1833_v12 = vsel %vm3968_vm10, %v1832_v59, %v1831_v8  ;;  %v4069_v59 = vld [vmem:[#allocation54_spill] sm:$0xff] }
 0x1f9   : > { %v1952_v3 = vperm.slane %v1281_v55, %v2999_v25  ;;  %v1954_v28 = vperm.slane %v1282_v24, %v3004_v61  ;;  %v1223_v24 = vmul.f32 0.015625, %v4068_v46  ;;  %v1835_v60 = vsel %vm3966_vm11, %v1834_v9, %v1833_v12  ;;  %v307_v12 = vld [vmem:[%s2466_s22 + $0x5d8] sm:$0xff] }
 0x1fa   : > { %v1950_v7 = vperm.slane %v1280_v37, %v2992_v27  ;;  %v1783_v40 = vperm.slane %v1194_v51, %v2951_v2  ;;  %v1782_v16 = vperm.slane %v1193_v43, %v2948_v4  ;;  %v1838_v58 = vperm.slane %v1222_v15, %v3033_v33  ;;  %v4071_v51 = vld [vmem:[#allocation9_spill] sm:$0xff]  ;;  %v4072_v43 = vld [vmem:[#allocation10_spill] sm:$0xff] }
 0x1fb   : > { %924 = vadd.xlane.f32.xlu2 %v923_v38  ;;  %921 = vadd.xlane.f32.xlu1 %v920_v31  ;;  %v932_v38 = vsel %vm376_vm0, %v305_v6, 0.0  ;;  %v929_v31 = vsel %vm376_vm0, %v304_v5, 0.0  ;;  %v3362_v29 = vsel %vm1682_vm6, %v1731_v0, %v1730_v19  ;;  %v3365_v9 = vmul.f32 0.015625, %v4070_v1  ;;  %v4073_v5 = vld [vmem:[#allocation30_spill] sm:$0xff]  ;;  %v308_v15 = vld [vmem:[%s2466_s22 + $0x5e0] sm:$0xff] }
 0x1fc   : > { %v1951_v23 = vsel %vm1686_vm7, %v1950_v7, %v1949_v53  ;;  %918 = vadd.xlane.f32.xlu0 %v917_v17  ;;  %v926_v17 = vsel %vm376_vm0, %v303_v18, 0.0  ;;  %v1840_v36 = vperm.slane %v1223_v24, %v3026_v14  ;;  %v3370_v10 = vmul.f32 0.015625, %v4071_v51 }
 0x1fd   : > { %v1953_v20 = vsel %vm3972_vm8, %v1952_v3, %v1951_v23  ;;  %v1837_v23 = vsel %vm3967_vm12, %v1836_v50, %v1835_v60  ;;  %v1781_v19 = vsel %vm1718_vm15, %v1780_v26, %v1779_v47  ;;  %v1785_v6 = vperm.slane %v3342_v54, %v2959_v44  ;;  %v306_v26 = vld [vmem:[%s2466_s22 + $0x5d0] sm:$0xff]  ;;  %v4074_v47 = vld [vmem:[#allocation28_spill] sm:$0xff]  ;;  %v4075_v60 = vld [vmem:[#allocation29_spill] sm:$0xff] }
 0x1fe   : > { %v799_v42 = vpop.xlane.xlu2 %798  ;;  %v796_v48 = vpop.xlane.xlu1 %795  ;;  %v1955_v53 = vsel %vm3965_vm9, %v1954_v28, %v1953_v20  ;;  %v1224_v28 = vmul.f32 0.015625, %v4069_v59  ;;  %v3373_v20 = vmul.f32 0.015625, %v4072_v43  ;;  %vm2185_vm9 = vcmask 1041409   ;;  %v4077_v43 = vld [vmem:[#allocation58_spill] sm:$0xff] }
 0x1ff   : > { %v1285_v55 = vmul.f32 0.015625, %v799_v42  ;;  %v1284_v35 = vmul.f32 0.015625, %v796_v48  ;;  %v793_v49 = vpop.xlane.xlu0 %792  ;;  %v1196_v21 = vmul.f32 0.015625, %v4073_v5  ;;  %v1784_v42 = vsel %vm1662_vm1, %v1783_v40, %v1782_v16 }
 0x200   : > { %v1283_v37 = vmul.f32 0.015625, %v793_v49  ;;  %v1842_v48 = vperm.slane %v1224_v28, %v3058_v57  ;;  %v1839_v18 = vsel %vm1710_vm13, %v1838_v58, %v1837_v23  ;;  %v3389_v24 = vmul.f32 0.015625, %v4074_v47  ;;  %v4076_v58 = vld [vmem:[#allocation53_spill] sm:$0xff] }
 0x201   : > { %v1958_v3 = vperm.slane %v1284_v35, %v3018_v34  ;;  %v1960_v7 = vperm.slane %v1285_v55, %v3029_v30  ;;  %v1841_v54 = vsel %vm1714_vm14, %v1840_v36, %v1839_v18  ;;  %v938_v40 = vsel %vm376_vm0, %v307_v12, 0.0 }
 0x202   : > { %v1956_v8 = vperm.slane %v1283_v37, %v3012_v13  ;;  %v1197_v37 = vmul.f32 0.015625, %v4075_v60  ;;  %v1787_v16 = vperm.slane %v1196_v21, %v2964_v45  ;;  %v1225_v59 = vmul.f32 0.015625, %v4076_v58 }
 0x203   : > { %933 = vadd.xlane.f32.xlu2 %v932_v38  ;;  %930 = vadd.xlane.f32.xlu1 %v929_v31  ;;  %v941_v31 = vsel %vm376_vm0, %v308_v15, 0.0  ;;  %v1843_v28 = vsel %vm1718_vm15, %v1842_v48, %v1841_v54  ;;  %v1735_v1 = vperm.slane %v3373_v20, %v2999_v25  ;;  %v1786_v23 = vsel %vm3969_vm2, %v1785_v6, %v1784_v42  ;;  %v4078_v15 = vld [vmem:[#allocation33_spill] sm:$0xff] }
 0x204   : > { %v1957_v0 = vsel %vm3968_vm10, %v1956_v8, %v1955_v53  ;;  %927 = vadd.xlane.f32.xlu0 %v926_v17  ;;  %v935_v17 = vsel %vm376_vm0, %v306_v26, 0.0  ;;  %v2186_v36 = vsel %vm2185_vm9, %v1781_v19, %v3248_v41  ;;  %v1791_v51 = vperm.slane %v3389_v24, %v2979_v11  ;;  %v311_v19 = vld [vmem:[%s2466_s22 + $0x5f8] sm:$0xff]  ;;  %v4079_v26 = vld [vmem:[#allocation57_spill] sm:$0xff] }
 0x205   : > { %v1959_v56 = vsel %vm3966_vm11, %v1958_v3, %v1957_v0  ;;  %vm2187_vm11 = vcmask 1042434   ;;  %v1226_v0 = vmul.f32 0.015625, %v4077_v43  ;;  %vm2191_vm10 = vcmask 1044484  }
 0x206   : > { %v808_v50 = vpop.xlane.xlu2 %807  ;;  %v805_v53 = vpop.xlane.xlu1 %804  ;;  %v1961_v46 = vsel %vm3967_vm12, %v1960_v7, %v1959_v56  ;;  %vm2189_vm12 = vcmask 1043459   ;;  %v1789_v20 = vperm.slane %v1197_v37, %v2971_v39  ;;  %v1788_v6 = vsel %vm1670_vm3, %v1787_v16, %v1786_v23  ;;  %v310_v56 = vld [vmem:[%s2466_s22 + $0x5f0] sm:$0xff] }
 0x207   : > { %v1288_v55 = vmul.f32 0.015625, %v808_v50  ;;  %v1287_v35 = vmul.f32 0.015625, %v805_v53  ;;  %v802_v49 = vpop.xlane.xlu0 %801  ;;  %v2188_v21 = vsel %vm2187_vm11, %v1843_v28, %v2186_v36  ;;  %v1199_v12 = vmul.f32 0.015625, %v4078_v15  ;;  %v4084_v15 = vld [vmem:[#allocation13_spill] sm:$0xff] }
 0x208   : > { %v1286_v38 = vmul.f32 0.015625, %v802_v49  ;;  %v1844_v42 = vperm.slane %v1225_v59, %v2948_v4  ;;  %v2190_v48 = vsel %vm2189_vm12, %v3073_v32, %v2188_v21  ;;  %v1227_v47 = vmul.f32 0.015625, %v4079_v26  ;;  %v4081_v59 = vld [vmem:[#allocation56_spill] sm:$0xff]  ;;  %v4083_v21 = vld [vmem:[#allocation31_spill] sm:$0xff] }
 0x209   : > { %v1964_v3 = vperm.slane %v1287_v35, %v3026_v14  ;;  %v1966_v7 = vperm.slane %v1288_v55, %v3058_v57  ;;  %v1845_v49 = vperm.slane %v1226_v0, %v2951_v2  ;;  %v950_v37 = vsel %vm376_vm0, %v311_v19, 0.0  ;;  %v314_v19 = vld [vmem:[%s2466_s22 + $0x610] sm:$0xff]  ;;  %v4085_v26 = vld [vmem:[#allocation60_spill] sm:$0xff] }
 0x20a   : > { %v1962_v8 = vperm.slane %v1286_v38, %v3033_v33  ;;  %v947_v32 = vsel %vm376_vm0, %v310_v56, 0.0  ;;  %v4080_v38 = vld [vmem:[#allocation32_spill] sm:$0xff]  ;;  %v1793_v58 = vperm.slane %v1199_v12, %v2983_v52  ;;  %v1228_v28 = vmul.f32 0.015625, %v4081_v59  ;;  %v313_v56 = vld [vmem:[%s2466_s22 + $0x608] sm:$0xff] }
 0x20b   : > { %942 = vadd.xlane.f32.xlu2 %v941_v31  ;;  %939 = vadd.xlane.f32.xlu1 %v938_v40  ;;  %v1200_v31 = vmul.f32 0.015625, %v4080_v38  ;;  %v1734_v23 = vsel %vm1686_vm7, %v1733_v62, %v3362_v29  ;;  %v1847_v36 = vperm.slane %v1227_v47, %v2959_v44  ;;  %v1737_v43 = vperm.slane %v3370_v10, %v3004_v61 }
 0x20c   : > { %v1963_v5 = vsel %vm1710_vm13, %v1962_v8, %v1961_v46  ;;  %936 = vadd.xlane.f32.xlu0 %v935_v17  ;;  %v309_v46 = vld [vmem:[%s2466_s22 + $0x5e8] sm:$0xff]  ;;  %v1790_v17 = vsel %vm3971_vm4, %v1789_v20, %v1788_v6  ;;  %v1739_v8 = vperm.slane %v3365_v9, %v3012_v13  ;;  %v1846_v0 = vsel %vm1662_vm1, %v1845_v49, %v1844_v42 }
 0x20d   : > { %v1965_v41 = vsel %vm1714_vm14, %v1964_v3, %v1963_v5  ;;  %v944_v3 = vsel %vm376_vm0, %v309_v46, 0.0  ;;  %v4082_v5 = vld [vmem:[#allocation61_spill] sm:$0xff]  ;;  %v1795_v22 = vperm.slane %v1200_v31, %v2992_v27  ;;  %v1792_v62 = vsel %vm3970_vm5, %v1791_v51, %v1790_v17 }
 0x20e   : > { %v1967_v18 = vsel %vm1718_vm15, %v1966_v7, %v1965_v41  ;;  %v817_v50 = vpop.xlane.xlu2 %816  ;;  %v814_v53 = vpop.xlane.xlu1 %813  ;;  %v1229_v20 = vmul.f32 0.015625, %v4082_v5  ;;  %v1201_v41 = vmul.f32 0.015625, %v4083_v21  ;;  %v1736_v10 = vsel %vm3972_vm8, %v1735_v1, %v1734_v23  ;;  %v4090_v5 = vld [vmem:[#allocation11_spill] sm:$0xff] }
 0x20f   : > { %v1291_v24 = vmul.f32 0.015625, %v817_v50  ;;  %v1290_v54 = vmul.f32 0.015625, %v814_v53  ;;  %v811_v55 = vpop.xlane.xlu0 %810  ;;  %v3425_v35 = vsel %vm2191_vm10, %v1967_v18, %v2190_v48  ;;  %v3459_v12 = vmul.f32 0.015625, %v4084_v15  ;;  %v312_v53 = vld [vmem:[%s2466_s22 + $0x600] sm:$0xff]  ;;  %v317_v15 = vld [vmem:[%s2466_s22 + $0x628] sm:$0xff] }
 0x210   : > { %v1289_v60 = vmul.f32 0.015625, %v811_v55  ;;  %v1794_v42 = vsel %vm1682_vm6, %v1793_v58, %v1792_v62  ;;  %v1849_v48 = vperm.slane %v1228_v28, %v2964_v45  ;;  %v1848_v46 = vsel %vm3969_vm2, %v1847_v36, %v1846_v0  ;;  %v4089_v36 = vld [vmem:[#allocation64_spill] sm:$0xff]  ;;  %v4092_v62 = vld [vmem:[#allocation35_spill] sm:$0xff] }
 0x211   : > { %v1971_v40 = vperm.slane %v1291_v24, %v2959_v44  ;;  %v1969_v16 = vperm.slane %v1290_v54, %v2951_v2  ;;  %v1230_v51 = vmul.f32 0.015625, %v4085_v26  ;;  %v1851_v55 = vperm.slane %v1229_v20, %v2971_v39 }
 0x212   : > { %v1968_v7 = vperm.slane %v1289_v60, %v2948_v4  ;;  %v959_v49 = vsel %vm376_vm0, %v314_v19, 0.0  ;;  %v956_v60 = vsel %vm376_vm0, %v313_v56, 0.0  ;;  %v953_v31 = vsel %vm376_vm0, %v312_v53, 0.0 }
 0x213   : > { %951 = vadd.xlane.f32.xlu2 %v950_v37  ;;  %948 = vadd.xlane.f32.xlu1 %v947_v32  ;;  %v1797_v37 = vperm.slane %v1201_v41, %v2999_v25  ;;  %v1796_v32 = vsel %vm1686_vm7, %v1795_v22, %v1794_v42  ;;  %v1850_v23 = vsel %vm1670_vm3, %v1849_v48, %v1848_v46  ;;  %v1232_v0 = vmul.f32 0.015625, %v4089_v36  ;;  %v316_v42 = vld [vmem:[%s2466_s22 + $0x620] sm:$0xff] }
 0x214   : > { %v1970_v6 = vsel %vm1662_vm1, %v1969_v16, %v1968_v7  ;;  %945 = vadd.xlane.f32.xlu0 %v944_v3  ;;  %v4087_v3 = vld [vmem:[#allocation59_spill] sm:$0xff]  ;;  %v1853_v7 = vperm.slane %v1230_v51, %v2979_v11  ;;  %v3482_v20 = vmul.f32 0.015625, %v4090_v5  ;;  %v1852_v41 = vsel %vm3971_vm4, %v1851_v55, %v1850_v23  ;;  %v315_v51 = vld [vmem:[%s2466_s22 + $0x618] sm:$0xff] }
 0x215   : > { %v1972_v29 = vsel %vm3969_vm2, %v1971_v40, %v1970_v6  ;;  %v4086_v40 = vld [vmem:[#allocation36_spill] sm:$0xff]  ;;  %v1231_v17 = vmul.f32 0.015625, %v4087_v3  ;;  %vm4088_vm2 = vcmask 654912   ;;  %v1741_v22 = vperm.slane %v3459_v12, %v3018_v34  ;;  %v4098_v5 = vld [vmem:[#allocation67_spill] sm:$0xff] }
 0x216   : > { %v826_v18 = vpop.xlane.xlu2 %825  ;;  %v823_v50 = vpop.xlane.xlu1 %822  ;;  %v1202_v16 = vmul.f32 0.015625, %v4086_v40  ;;  %v1738_v28 = vsel %vm4088_vm2, %v1737_v43, %v1736_v10  ;;  %v4091_v6 = vld [vmem:[#allocation12_spill] sm:$0xff]  ;;  %v1203_v19 = vmul.f32 0.015625, %v4092_v62  ;;  %v1798_v56 = vsel %vm3972_vm8, %v1797_v37, %v1796_v32 }
 0x217   : > { %v1294_v47 = vmul.f32 0.015625, %v826_v18  ;;  %v1293_v24 = vmul.f32 0.015625, %v823_v50  ;;  %v820_v54 = vpop.xlane.xlu0 %819  ;;  %v3485_v21 = vmul.f32 0.015625, %v4091_v6  ;;  %v1855_v18 = vperm.slane %v1231_v17, %v2983_v52  ;;  %v4093_v50 = vld [vmem:[#allocation63_spill] sm:$0xff] }
 0x218   : > { %v1292_v1 = vmul.f32 0.015625, %v820_v54  ;;  %v1799_v48 = vperm.slane %v1202_v16, %v3004_v61  ;;  %v1233_v53 = vmul.f32 0.015625, %v4093_v50  ;;  %v1854_v12 = vsel %vm3970_vm5, %v1853_v7, %v1852_v41 }
 0x219   : > { %v1975_v38 = vperm.slane %v1293_v24, %v2971_v39  ;;  %v1977_v58 = vperm.slane %v1294_v47, %v2979_v11  ;;  %v1857_v47 = vperm.slane %v1232_v0, %v2992_v27  ;;  %v968_v37 = vsel %vm376_vm0, %v317_v15, 0.0  ;;  %v320_v15 = vld [vmem:[%s2466_s22 + $0x640] sm:$0xff] }
 0x21a   : > { %v1973_v59 = vperm.slane %v1292_v1, %v2964_v45  ;;  %v4094_v1 = vld [vmem:[#allocation34_spill] sm:$0xff]  ;;  %v965_v32 = vsel %vm376_vm0, %v316_v42, 0.0  ;;  %v962_v3 = vsel %vm376_vm0, %v315_v51, 0.0  ;;  %v1859_v17 = vperm.slane %v1233_v53, %v2999_v25  ;;  %v319_v42 = vld [vmem:[%s2466_s22 + $0x638] sm:$0xff] }
 0x21b   : > { %960 = vadd.xlane.f32.xlu2 %v959_v49  ;;  %957 = vadd.xlane.f32.xlu1 %v956_v60  ;;  %v1204_v49 = vmul.f32 0.015625, %v4094_v1  ;;  %vm4096_vm2 = vcmask 720512   ;;  %v1235_v6 = vmul.f32 0.015625, %v4098_v5  ;;  %v1745_v41 = vperm.slane %v3482_v20, %v3033_v33  ;;  %v4109_v5 = vld [vmem:[#allocation14_spill] sm:$0xff] }
 0x21c   : > { %v1974_v43 = vsel %vm1670_vm3, %v1973_v59, %v1972_v29  ;;  %954 = vadd.xlane.f32.xlu0 %v953_v31  ;;  %v4095_v31 = vld [vmem:[#allocation62_spill] sm:$0xff]  ;;  %v1740_v23 = vsel %vm4096_vm2, %v1739_v8, %v1738_v28  ;;  %v4100_v28 = vld [vmem:[#allocation15_spill] sm:$0xff] }
 0x21d   : > { %v1976_v10 = vsel %vm3971_vm4, %v1975_v38, %v1974_v43  ;;  %v1801_v38 = vperm.slane %v1203_v19, %v3012_v13  ;;  %v1234_v40 = vmul.f32 0.015625, %v4095_v31  ;;  %v1743_v43 = vperm.slane %v3485_v21, %v3029_v30 }
 0x21e   : > { %v835_v46 = vpop.xlane.xlu2 %834  ;;  %v832_v29 = vpop.xlane.xlu1 %831  ;;  %v1978_v26 = vsel %vm3970_vm5, %v1977_v58, %v1976_v10  ;;  %v1856_v58 = vsel %vm1682_vm6, %v1855_v18, %v1854_v12  ;;  %vm4097_vm5 = vcmask 654912   ;;  %vm4099_vm4 = vcmask 786112   ;;  %v4102_v18 = vld [vmem:[#allocation66_spill] sm:$0xff] }
 0x21f   : > { %v1297_v24 = vmul.f32 0.015625, %v835_v46  ;;  %v1296_v54 = vmul.f32 0.015625, %v832_v29  ;;  %v829_v55 = vpop.xlane.xlu0 %828  ;;  %v1800_v36 = vsel %vm4097_vm5, %v1799_v48, %v1798_v56  ;;  %v1858_v0 = vsel %vm1686_vm7, %v1857_v47, %v1856_v58  ;;  %vm4101_vm5 = vmmov %vm4096_vm2  ;;  %v318_v29 = vld [vmem:[%s2466_s22 + $0x630] sm:$0xff] }
 0x220   : > { %v1295_v60 = vmul.f32 0.015625, %v829_v55  ;;  %v1742_v9 = vsel %vm4099_vm4, %v1741_v22, %v1740_v23  ;;  %v3528_v62 = vmul.f32 0.015625, %v4100_v28  ;;  %v1803_v19 = vperm.slane %v1204_v49, %v3018_v34  ;;  %v4104_v55 = vld [vmem:[#allocation38_spill] sm:$0xff] }
 0x221   : > { %v1981_v16 = vperm.slane %v1296_v54, %v2992_v27  ;;  %v1983_v59 = vperm.slane %v1297_v24, %v2999_v25  ;;  %v1861_v56 = vperm.slane %v1234_v40, %v3004_v61  ;;  %v1802_v48 = vsel %vm4101_vm5, %v1801_v38, %v1800_v36 }
 0x222   : > { %v1979_v7 = vperm.slane %v1295_v60, %v2983_v52  ;;  %v1860_v21 = vsel %vm3972_vm8, %v1859_v17, %v1858_v0  ;;  %v1236_v22 = vmul.f32 0.015625, %v4102_v18  ;;  %v1863_v12 = vperm.slane %v1235_v6, %v3012_v13  ;;  %v4107_v17 = vld [vmem:[#allocation70_spill] sm:$0xff]  ;;  %v323_v18 = vld [vmem:[%s2466_s22 + $0x658] sm:$0xff] }
 0x223   : > { %969 = vadd.xlane.f32.xlu2 %v968_v37  ;;  %966 = vadd.xlane.f32.xlu1 %v965_v32  ;;  %v1206_v1 = vmul.f32 0.015625, %v4104_v55  ;;  %v977_v60 = vsel %vm376_vm0, %v320_v15, 0.0  ;;  %v974_v37 = vsel %vm376_vm0, %v319_v42, 0.0  ;;  %v4105_v32 = vld [vmem:[#allocation65_spill] sm:$0xff]  ;;  %vm4106_vm4 = vcmask 654912   ;;  %v4119_v55 = vld [vmem:[#allocation68_spill] sm:$0xff] }
 0x224   : > { %v1980_v8 = vsel %vm1682_vm6, %v1979_v7, %v1978_v26  ;;  %963 = vadd.xlane.f32.xlu0 %v962_v3  ;;  %v4103_v26 = vld [vmem:[#allocation39_spill] sm:$0xff]  ;;  %v1237_v38 = vmul.f32 0.015625, %v4105_v32  ;;  %v1862_v31 = vsel %vm4106_vm4, %v1861_v56, %v1860_v21  ;;  %v1865_v3 = vperm.slane %v1236_v22, %v3018_v34  ;;  %v4113_v15 = vld [vmem:[#allocation69_spill] sm:$0xff] }
 0x225   : > { %v1982_v10 = vsel %vm1686_vm7, %v1981_v16, %v1980_v8  ;;  %v1205_v51 = vmul.f32 0.015625, %v4103_v26  ;;  %v971_v16 = vsel %vm376_vm0, %v318_v29, 0.0  ;;  %v1238_v58 = vmul.f32 0.015625, %v4107_v17  ;;  %v322_v22 = vld [vmem:[%s2466_s22 + $0x650] sm:$0xff]  ;;  %v321_v29 = vld [vmem:[%s2466_s22 + $0x648] sm:$0xff] }
 0x226   : > { %v844_v50 = vpop.xlane.xlu2 %843  ;;  %v841_v53 = vpop.xlane.xlu1 %840  ;;  %v1984_v46 = vsel %vm3972_vm8, %v1983_v59, %v1982_v10  ;;  %vm4108_vm2 = vcmask 851712   ;;  %v1864_v0 = vsel %vm4101_vm5, %v1863_v12, %v1862_v31  ;;  %v3557_v6 = vmul.f32 0.015625, %v4109_v5  ;;  %v4112_v10 = vld [vmem:[#allocation37_spill] sm:$0xff] }
 0x227   : > { %v1300_v47 = vmul.f32 0.015625, %v844_v50  ;;  %v1299_v24 = vmul.f32 0.015625, %v841_v53  ;;  %v838_v54 = vpop.xlane.xlu0 %837  ;;  %v1744_v23 = vsel %vm4108_vm2, %v1743_v43, %v1742_v9  ;;  %v1805_v36 = vperm.slane %v1205_v51, %v3029_v30  ;;  %vm4114_vm2 = vmmov %vm4101_vm5  ;;  %v4118_v51 = vld [vmem:[#allocation40_spill] sm:$0xff] }
 0x228   : > { %v1298_v49 = vmul.f32 0.015625, %v838_v54  ;;  %v1747_v8 = vperm.slane %v3528_v62, %v3026_v14  ;;  %vm4110_vm4 = vcmask 786112   ;;  %vm4111_vm8 = vcmask 654912  }
 0x229   : > { %v1987_v40 = vperm.slane %v1299_v24, %v3012_v13  ;;  %v1989_v59 = vperm.slane %v1300_v47, %v3018_v34  ;;  %v1804_v28 = vsel %vm4110_vm4, %v1803_v19, %v1802_v48  ;;  %v1207_v43 = vmul.f32 0.015625, %v4112_v10  ;;  %vm4115_vm5 = vmmov %vm4110_vm4 }
 0x22a   : > { %v1985_v7 = vperm.slane %v1298_v49, %v3004_v61  ;;  %v1867_v9 = vperm.slane %v1237_v38, %v3029_v30  ;;  %v1239_v42 = vmul.f32 0.015625, %v4113_v15  ;;  %v1807_v50 = vperm.slane %v1206_v1, %v3033_v33 }
 0x22b   : > { %978 = vadd.xlane.f32.xlu2 %v977_v60  ;;  %975 = vadd.xlane.f32.xlu1 %v974_v37  ;;  %v1866_v62 = vsel %vm4115_vm5, %v1865_v3, %v1864_v0  ;;  %v1869_v53 = vperm.slane %v1238_v58, %v3033_v33  ;;  %v1208_v12 = vmul.f32 0.015625, %v4118_v51  ;;  %v1240_v49 = vmul.f32 0.015625, %v4119_v55 }
 0x22c   : > { %v1986_v56 = vsel %vm4111_vm8, %v1985_v7, %v1984_v46  ;;  %972 = vadd.xlane.f32.xlu0 %v971_v16  ;;  %vm4116_vm8 = vmmov %vm4110_vm4  ;;  %vm4117_vm4 = vcmask 851712   ;;  %v986_v1 = vsel %vm376_vm0, %v323_v18, 0.0  ;;  %v983_v37 = vsel %vm376_vm0, %v322_v22, 0.0 }
 0x22d   : > { %v1988_v21 = vsel %vm4114_vm2, %v1987_v40, %v1986_v56  ;;  %v1806_v26 = vsel %vm4117_vm4, %v1805_v36, %v1804_v28  ;;  %v1871_v32 = vperm.slane %v1239_v42, %v3026_v14  ;;  %vm4120_vm2 = vmmov %vm4117_vm4  ;;  %v980_v40 = vsel %vm376_vm0, %v321_v29, 0.0 }
 0x22e   : > { %v853_v19 = vpop.xlane.xlu2 %852  ;;  %v850_v48 = vpop.xlane.xlu1 %849  ;;  %v1990_v46 = vsel %vm4116_vm8, %v1989_v59, %v1988_v21  ;;  %v1868_v38 = vsel %vm4120_vm2, %v1867_v9, %v1866_v62  ;;  %v1809_v16 = vperm.slane %v1207_v43, %v3026_v14  ;;  %v1808_v59 = vsel %vm1710_vm13, %v1807_v50, %v1806_v26  ;;  %vm4121_vm5 = vmmov %vm4120_vm2  ;;  %v326_v43 = vld [vmem:[%s2466_s22 + $0x670] sm:$0xff]  ;;  %v325_v9 = vld [vmem:[%s2466_s22 + $0x668] sm:$0xff] }
 0x22f   : > { %v1303_v47 = vmul.f32 0.015625, %v853_v19  ;;  %v1302_v24 = vmul.f32 0.015625, %v850_v48  ;;  %v847_v54 = vpop.xlane.xlu0 %846  ;;  %v1870_v3 = vsel %vm1710_vm13, %v1869_v53, %v1868_v38  ;;  %v1811_v7 = vperm.slane %v1208_v12, %v3058_v57  ;;  %v327_v38 = vld [vmem:[%s2466_s22 + $0x678] sm:$0xff] }
 0x230   : > { %v1301_v60 = vmul.f32 0.015625, %v847_v54  ;;  %v1873_v36 = vperm.slane %v1240_v49, %v3058_v57  ;;  %v1749_v5 = vperm.slane %v3557_v6, %v3058_v57  ;;  %v1746_v28 = vsel %vm1710_vm13, %v1745_v41, %v1744_v23  ;;  %v324_v6 = vld [vmem:[%s2466_s22 + $0x660] sm:$0xff] }
 0x231   : > { %v1993_v31 = vperm.slane %v1302_v24, %v3033_v33  ;;  %v1995_v17 = vperm.slane %v1303_v47, %v3026_v14  ;;  %v1872_v56 = vsel %vm1714_vm14, %v1871_v32, %v1870_v3  ;;  %v1748_v15 = vsel %vm1714_vm14, %v1747_v8, %v1746_v28  ;;  %v332_v28 = vld [vmem:[%s2466_s22 + $0x6a0] sm:$0xff] }
 0x232   : > { %v1991_v58 = vperm.slane %v1301_v60, %v3029_v30  ;;  %v1810_v42 = vsel %vm1714_vm14, %v1809_v16, %v1808_v59  ;;  %v1874_v23 = vsel %vm1718_vm15, %v1873_v36, %v1872_v56  ;;  %v995_v19 = vsel %vm376_vm0, %v326_v43, 0.0  ;;  %v329_v60 = vld [vmem:[%s2466_s22 + $0x688] sm:$0xff]  ;;  %v331_v56 = vld [vmem:[%s2466_s22 + $0x698] sm:$0xff] }
 0x233   : > { %987 = vadd.xlane.f32.xlu2 %v986_v1  ;;  %984 = vadd.xlane.f32.xlu1 %v983_v37  ;;  %v1812_v50 = vsel %vm1718_vm15, %v1811_v7, %v1810_v42  ;;  %v992_v8 = vsel %vm376_vm0, %v325_v9, 0.0  ;;  %v1750_v48 = vsel %vm1718_vm15, %v1749_v5, %v1748_v15  ;;  %v989_v26 = vsel %vm376_vm0, %v324_v6, 0.0  ;;  %v328_v1 = vld [vmem:[%s2466_s22 + $0x680] sm:$0xff]  ;;  %v330_v15 = vld [vmem:[%s2466_s22 + $0x690] sm:$0xff] }
 0x234   : > { %v1992_v0 = vsel %vm4121_vm5, %v1991_v58, %v1990_v46  ;;  %981 = vadd.xlane.f32.xlu0 %v980_v40  ;;  %v2199_v51 = vsel %vm2185_vm9, %v1812_v50, %v1750_v48  ;;  %v998_v59 = vsel %vm376_vm0, %v327_v38, 0.0  ;;  %vm4122_vm9 = vcmask 195712   ;;  %v334_v48 = vld [vmem:[%s2466_s22 + $0x6b0] sm:$0xff] }
 0x235   : > { %v1994_v10 = vsel %vm1710_vm13, %v1993_v31, %v1992_v0  ;;  %v2200_v24 = vsel %vm2187_vm11, %v1874_v23, %v2199_v51  ;;  %v1013_v6 = vsel %vm376_vm0, %v332_v28, 0.0  ;;  %v1010_v50 = vsel %vm376_vm0, %v331_v56, 0.0  ;;  %v333_v51 = vld [vmem:[%s2466_s22 + $0x6a8] sm:$0xff] }
 0x236   : > { %v862_v21 = vpop.xlane.xlu2 %861  ;;  %v859_v18 = vpop.xlane.xlu1 %858  ;;  %v1996_v22 = vsel %vm1714_vm14, %v1995_v17, %v1994_v10  ;;  %v2201_v54 = vsel %vm2189_vm12, %v3225_v63, %v2200_v24  ;;  %v1004_v17 = vsel %vm376_vm0, %v329_v60, 0.0  ;;  %v1001_v63 = vsel %vm376_vm0, %v328_v1, 0.0 }
 0x237   : > { %v1306_v20 = vmul.f32 0.015625, %v862_v21  ;;  %v1305_v62 = vmul.f32 0.015625, %v859_v18  ;;  %v856_v41 = vpop.xlane.xlu0 %855  ;;  %vm4124_vm11 = vcmask 392512   ;;  %v1019_v60 = vsel %vm376_vm0, %v334_v48, 0.0 }
 0x238   : > { %v1304_v53 = vmul.f32 0.015625, %v856_v41  ;;  %vm4125_vm12 = vcmask 589312   ;;  %vm4126_vm8 = vcmask 654912   ;;  %vm4127_vm4 = vcmask 720512  }
 0x239   : > { %v2000_v46 = vperm.slane %v1306_v20, %v2951_v2  ;;  %v1999_v29 = vperm.slane %v1305_v62, %v2948_v4  ;;  %v1007_v62 = vsel %vm376_vm0, %v330_v15, 0.0  ;;  %vm4128_vm2 = vcmask 786112  }
 0x23a   : > { %v1997_v12 = vperm.slane %v1304_v53, %v3058_v57 }
 0x23b   : > { %v2001_v47 = vsel %vm1662_vm1, %v2000_v46, %v1999_v29  ;;  %996 = vadd.xlane.f32.xlu2 %v995_v19  ;;  %993 = vadd.xlane.f32.xlu1 %v992_v8  ;;  %v335_v8 = vld [vmem:[%s2466_s22 + $0x6b8] sm:$0xff] }
 0x23c   : > { %v1998_v55 = vsel %vm1718_vm15, %v1997_v12, %v1996_v22  ;;  %990 = vadd.xlane.f32.xlu0 %v989_v26 }
 0x23d   : > { %v3621_v49 = vsel %vm2191_vm10, %v1998_v55, %v2201_v54  ;;  %vm4123_vm10 = vcmask 326912   ;;  %v1022_v55 = vsel %vm376_vm0, %v335_v8, 0.0 }
 0x23e   : > { %v871_v37 = vpop.xlane.xlu2 %870  ;;  %v868_v32 = vpop.xlane.xlu1 %867 }
 0x23f   : > { %v1309_v31 = vmul.f32 0.015625, %v871_v37  ;;  %v1308_v40 = vmul.f32 0.015625, %v868_v32  ;;  %v865_v16 = vpop.xlane.xlu0 %864  ;;  %v1016_v37 = vsel %vm376_vm0, %v333_v51, 0.0 }
 0x240   : > { %v1307_v3 = vmul.f32 0.015625, %v865_v16  ;;  %v338_v16 = vld [vmem:[%s2466_s22 + $0x6d0] sm:$0xff] }
 0x241   : > { %v2004_v58 = vperm.slane %v1308_v40, %v2964_v45  ;;  %v2006_v7 = vperm.slane %v1309_v31, %v2971_v39  ;;  %v1031_v28 = vsel %vm376_vm0, %v338_v16, 0.0 }
 0x242   : > { %v2002_v36 = vperm.slane %v1307_v3, %v2959_v44  ;;  %v337_v3 = vld [vmem:[%s2466_s22 + $0x6c8] sm:$0xff] }
 0x243   : > { %1005 = vadd.xlane.f32.xlu2 %v1004_v17  ;;  %1002 = vadd.xlane.f32.xlu1 %v1001_v63  ;;  %v1028_v56 = vsel %vm376_vm0, %v337_v3, 0.0 }
 0x244   : > { %v2003_v0 = vsel %vm4122_vm9, %v2002_v36, %v2001_v47  ;;  %999 = vadd.xlane.f32.xlu0 %v998_v59  ;;  %v336_v59 = vld [vmem:[%s2466_s22 + $0x6c0] sm:$0xff]  ;;  %vm2193_vm9 = vcmask 1045509  }
 0x245   : > { %v2005_v5 = vsel %vm1670_vm3, %v2004_v58, %v2003_v0 }
 0x246   : > { %v880_v10 = vpop.xlane.xlu2 %879  ;;  %v877_v43 = vpop.xlane.xlu1 %876  ;;  %v2007_v9 = vsel %vm4123_vm10, %v2006_v7, %v2005_v5  ;;  %vm4129_vm10 = vcmask 195712  }
 0x247   : > { %v1312_v42 = vmul.f32 0.015625, %v880_v10  ;;  %v1311_v21 = vmul.f32 0.015625, %v877_v43  ;;  %v874_v18 = vpop.xlane.xlu0 %873  ;;  %v1025_v43 = vsel %vm376_vm0, %v336_v59, 0.0 }
 0x248   : > { %v1310_v22 = vmul.f32 0.015625, %v874_v18  ;;  %v341_v18 = vld [vmem:[%s2466_s22 + $0x6e8] sm:$0xff] }
 0x249   : > { %v2010_v20 = vperm.slane %v1311_v21, %v2983_v52  ;;  %v2012_v41 = vperm.slane %v1312_v42, %v2992_v27 }
 0x24a   : > { %v2008_v23 = vperm.slane %v1310_v22, %v2979_v11  ;;  %v340_v22 = vld [vmem:[%s2466_s22 + $0x6e0] sm:$0xff] }
 0x24b   : > { %1014 = vadd.xlane.f32.xlu2 %v1013_v6  ;;  %1011 = vadd.xlane.f32.xlu1 %v1010_v50  ;;  %v1037_v8 = vsel %vm376_vm0, %v340_v22, 0.0 }
 0x24c   : > { %v2009_v53 = vsel %vm4124_vm11, %v2008_v23, %v2007_v9  ;;  %1008 = vadd.xlane.f32.xlu0 %v1007_v62  ;;  %v339_v62 = vld [vmem:[%s2466_s22 + $0x6d8] sm:$0xff]  ;;  %vm4130_vm11 = vcmask 326912  }
 0x24d   : > { %v2011_v19 = vsel %vm1682_vm6, %v2010_v20, %v2009_v53 }
 0x24e   : > { %v889_v46 = vpop.xlane.xlu2 %888  ;;  %v886_v29 = vpop.xlane.xlu1 %885  ;;  %v2013_v26 = vsel %vm1686_vm7, %v2012_v41, %v2011_v19  ;;  %v1040_v19 = vsel %vm376_vm0, %v341_v18, 0.0 }
 0x24f   : > { %v1315_v12 = vmul.f32 0.015625, %v889_v46  ;;  %v1314_v47 = vmul.f32 0.015625, %v886_v29  ;;  %v883_v24 = vpop.xlane.xlu0 %882  ;;  %v1034_v46 = vsel %vm376_vm0, %v339_v62, 0.0 }
 0x250   : > { %v1313_v54 = vmul.f32 0.015625, %v883_v24  ;;  %v343_v24 = vld [vmem:[%s2466_s22 + $0x6f8] sm:$0xff] }
 0x251   : > { %v2016_v1 = vperm.slane %v1314_v47, %v3004_v61  ;;  %v2018_v32 = vperm.slane %v1315_v12, %v3012_v13  ;;  %v344_v47 = vld [vmem:[%s2466_s22 + $0x700] sm:$0xff]  ;;  %v1046_v3 = vsel %vm376_vm0, %v343_v24, 0.0 }
 0x252   : > { %v2014_v38 = vperm.slane %v1313_v54, %v2999_v25  ;;  %v1049_v16 = vsel %vm376_vm0, %v344_v47, 0.0 }
 0x253   : > { %1023 = vadd.xlane.f32.xlu2 %v1022_v55  ;;  %1020 = vadd.xlane.f32.xlu1 %v1019_v60  ;;  %v342_v60 = vld [vmem:[%s2466_s22 + $0x6f0] sm:$0xff] }
 0x254   : > { %v2015_v31 = vsel %vm4125_vm12, %v2014_v38, %v2013_v26  ;;  %1017 = vadd.xlane.f32.xlu0 %v1016_v37  ;;  %vm4131_vm12 = vcmask 392512  }
 0x255   : > { %v2017_v40 = vsel %vm4126_vm8, %v2016_v1, %v2015_v31  ;;  %vm4132_vm8 = vcmask 589312  }
 0x256   : > { %v898_v17 = vpop.xlane.xlu2 %897  ;;  %v895_v63 = vpop.xlane.xlu1 %894  ;;  %v2019_v58 = vsel %vm4127_vm4, %v2018_v32, %v2017_v40  ;;  %vm4133_vm4 = vcmask 654912  }
 0x257   : > { %v1318_v7 = vmul.f32 0.015625, %v898_v17  ;;  %v1317_v36 = vmul.f32 0.015625, %v895_v63  ;;  %v892_v0 = vpop.xlane.xlu0 %891  ;;  %v1043_v63 = vsel %vm376_vm0, %v342_v60, 0.0 }
 0x258   : > { %v1316_v5 = vmul.f32 0.015625, %v892_v0  ;;  %v346_v0 = vld [vmem:[%s2466_s22 + $0x710] sm:$0xff] }
 0x259   : > { %v2022_v10 = vperm.slane %v1317_v36, %v3029_v30  ;;  %v2024_v9 = vperm.slane %v1318_v7, %v3033_v33  ;;  %v347_v36 = vld [vmem:[%s2466_s22 + $0x718] sm:$0xff]  ;;  %v1055_v18 = vsel %vm376_vm0, %v346_v0, 0.0 }
 0x25a   : > { %v2020_v15 = vperm.slane %v1316_v5, %v3018_v34 }
 0x25b   : > { %1032 = vadd.xlane.f32.xlu2 %v1031_v28  ;;  %1029 = vadd.xlane.f32.xlu1 %v1028_v56 }
 0x25c   : > { %v2021_v42 = vsel %vm4128_vm2, %v2020_v15, %v2019_v58  ;;  %1026 = vadd.xlane.f32.xlu0 %v1025_v43  ;;  %vm4134_vm2 = vcmask 720512  }
 0x25d   : > { %v2023_v21 = vsel %vm4121_vm5, %v2022_v10, %v2021_v42  ;;  %v345_v10 = vld [vmem:[%s2466_s22 + $0x708] sm:$0xff]  ;;  %vm4135_vm5 = vcmask 786112  }
 0x25e   : > { %v907_v6 = vpop.xlane.xlu2 %906  ;;  %v904_v50 = vpop.xlane.xlu1 %903  ;;  %v2025_v20 = vsel %vm1710_vm13, %v2024_v9, %v2023_v21  ;;  %v1058_v21 = vsel %vm376_vm0, %v347_v36, 0.0 }
 0x25f   : > { %v1320_v41 = vmul.f32 0.015625, %v904_v50  ;;  %v901_v23 = vpop.xlane.xlu0 %900  ;;  %v1321_v26 = vmul.f32 0.015625, %v907_v6  ;;  %v1052_v6 = vsel %vm376_vm0, %v345_v10, 0.0 }
 0x260   : > { %v1319_v53 = vmul.f32 0.015625, %v901_v23  ;;  %v350_v23 = vld [vmem:[%s2466_s22 + $0x730] sm:$0xff] }
 0x261   : > { %v2028_v48 = vperm.slane %v1320_v41, %v3058_v57  ;;  %v2030_v31 = vperm.slane %v1321_v26, %v2948_v4  ;;  %v1067_v47 = vsel %vm376_vm0, %v350_v23, 0.0 }
 0x262   : > { %v2026_v29 = vperm.slane %v1319_v53, %v3026_v14  ;;  %v349_v53 = vld [vmem:[%s2466_s22 + $0x728] sm:$0xff] }
 0x263   : > { %1041 = vadd.xlane.f32.xlu2 %v1040_v19  ;;  %1038 = vadd.xlane.f32.xlu1 %v1037_v8  ;;  %v1064_v24 = vsel %vm376_vm0, %v349_v53, 0.0 }
 0x264   : > { %v2027_v51 = vsel %vm1714_vm14, %v2026_v29, %v2025_v20  ;;  %1035 = vadd.xlane.f32.xlu0 %v1034_v46  ;;  %v348_v46 = vld [vmem:[%s2466_s22 + $0x720] sm:$0xff] }
 0x265   : > { %v2029_v12 = vsel %vm1718_vm15, %v2028_v48, %v2027_v51 }
 0x266   : > { %v916_v54 = vpop.xlane.xlu2 %915  ;;  %v913_v55 = vpop.xlane.xlu1 %912  ;;  %v3686_v1 = vsel %vm2193_vm9, %v2029_v12, %v3425_v35 }
 0x267   : > { %v1324_v37 = vmul.f32 0.015625, %v916_v54  ;;  %v1323_v32 = vmul.f32 0.015625, %v913_v55  ;;  %v910_v38 = vpop.xlane.xlu0 %909  ;;  %v1061_v55 = vsel %vm376_vm0, %v348_v46, 0.0 }
 0x268   : > { %v1322_v40 = vmul.f32 0.015625, %v910_v38 }
 0x269   : > { %v2033_v17 = vperm.slane %v1323_v32, %v2959_v44  ;;  %v2035_v35 = vperm.slane %v1324_v37, %v2964_v45 }
 0x26a   : > { %v2031_v58 = vperm.slane %v1322_v40, %v2951_v2  ;;  %v352_v40 = vld [vmem:[%s2466_s22 + $0x740] sm:$0xff] }
 0x26b   : > { %1050 = vadd.xlane.f32.xlu2 %v1049_v16  ;;  %1047 = vadd.xlane.f32.xlu1 %v1046_v3  ;;  %v1073_v0 = vsel %vm376_vm0, %v352_v40, 0.0 }
 0x26c   : > { %v2032_v59 = vsel %vm1662_vm1, %v2031_v58, %v2030_v31  ;;  %1044 = vadd.xlane.f32.xlu0 %v1043_v63  ;;  %v353_v31 = vld [vmem:[%s2466_s22 + $0x748] sm:$0xff]  ;;  %v351_v63 = vld [vmem:[%s2466_s22 + $0x738] sm:$0xff] }
 0x26d   : > { %v2034_v7 = vsel %vm4129_vm10, %v2033_v17, %v2032_v59  ;;  %v1076_v36 = vsel %vm376_vm0, %v353_v31, 0.0  ;;  %vm4136_vm10 = vcmask 851712  }
 0x26e   : > { %v925_v5 = vpop.xlane.xlu2 %924  ;;  %v922_v28 = vpop.xlane.xlu1 %921  ;;  %v2036_v56 = vsel %vm1670_vm3, %v2035_v35, %v2034_v7 }
 0x26f   : > { %v1327_v43 = vmul.f32 0.015625, %v925_v5  ;;  %v1326_v9 = vmul.f32 0.015625, %v922_v28  ;;  %v919_v15 = vpop.xlane.xlu0 %918  ;;  %v1070_v28 = vsel %vm376_vm0, %v351_v63, 0.0 }
 0x270   : > { %v1325_v42 = vmul.f32 0.015625, %v919_v15  ;;  %v360_v15 = vld [vmem:[%s2466_s22 + $0x780] sm:$0xff] }
 0x271   : > { %v2039_v22 = vperm.slane %v1326_v9, %v2979_v11  ;;  %v2041_v50 = vperm.slane %v1327_v43, %v2983_v52  ;;  %v1097_v23 = vsel %vm376_vm0, %v360_v15, 0.0 }
 0x272   : > { %v2037_v20 = vperm.slane %v1325_v42, %v2971_v39  ;;  %v355_v42 = vld [vmem:[%s2466_s22 + $0x758] sm:$0xff] }
 0x273   : > { %1059 = vadd.xlane.f32.xlu2 %v1058_v21  ;;  %1056 = vadd.xlane.f32.xlu1 %v1055_v18  ;;  %v1082_v53 = vsel %vm376_vm0, %v355_v42, 0.0 }
 0x274   : > { %v2038_v62 = vsel %vm4130_vm11, %v2037_v20, %v2036_v56  ;;  %1053 = vadd.xlane.f32.xlu0 %v1052_v6  ;;  %v354_v6 = vld [vmem:[%s2466_s22 + $0x750] sm:$0xff] }
 0x275   : > { %v2040_v41 = vsel %vm4131_vm12, %v2039_v22, %v2038_v62 }
 0x276   : > { %v934_v19 = vpop.xlane.xlu2 %933  ;;  %v931_v8 = vpop.xlane.xlu1 %930  ;;  %v2042_v48 = vsel %vm1682_vm6, %v2041_v50, %v2040_v41 }
 0x277   : > { %v1330_v29 = vmul.f32 0.015625, %v934_v19  ;;  %v1329_v26 = vmul.f32 0.015625, %v931_v8  ;;  %v928_v51 = vpop.xlane.xlu0 %927  ;;  %v1079_v8 = vsel %vm376_vm0, %v354_v6, 0.0 }
 0x278   : > { %v1328_v12 = vmul.f32 0.015625, %v928_v51  ;;  %v363_v51 = vld [vmem:[%s2466_s22 + $0x798] sm:$0xff] }
 0x279   : > { %v2045_v54 = vperm.slane %v1329_v26, %v2999_v25  ;;  %v2047_v60 = vperm.slane %v1330_v29, %v3004_v61  ;;  %v1106_v40 = vsel %vm376_vm0, %v363_v51, 0.0 }
 0x27a   : > { %v2043_v37 = vperm.slane %v1328_v12, %v2992_v27  ;;  %v362_v12 = vld [vmem:[%s2466_s22 + $0x790] sm:$0xff] }
 0x27b   : > { %1068 = vadd.xlane.f32.xlu2 %v1067_v47  ;;  %1065 = vadd.xlane.f32.xlu1 %v1064_v24 }
 0x27c   : > { %v2044_v32 = vsel %vm1686_vm7, %v2043_v37, %v2042_v48  ;;  %1062 = vadd.xlane.f32.xlu0 %v1061_v55  ;;  %v361_v55 = vld [vmem:[%s2466_s22 + $0x788] sm:$0xff] }
 0x27d   : > { %v2046_v38 = vsel %vm4132_vm8, %v2045_v54, %v2044_v32  ;;  %v1100_v63 = vsel %vm376_vm0, %v361_v55, 0.0 }
 0x27e   : > { %v943_v16 = vpop.xlane.xlu2 %942  ;;  %v940_v3 = vpop.xlane.xlu1 %939  ;;  %v2048_v17 = vsel %vm4133_vm4, %v2047_v60, %v2046_v38 }
 0x27f   : > { %v1333_v35 = vmul.f32 0.015625, %v943_v16  ;;  %v1332_v58 = vmul.f32 0.015625, %v940_v3  ;;  %v937_v59 = vpop.xlane.xlu0 %936  ;;  %v1103_v16 = vsel %vm376_vm0, %v362_v12, 0.0 }
 0x280   : > { %v1331_v7 = vmul.f32 0.015625, %v937_v59  ;;  %v366_v59 = vld [vmem:[%s2466_s22 + $0x7b0] sm:$0xff] }
 0x281   : > { %v2051_v5 = vperm.slane %v1332_v58, %v3018_v34  ;;  %v2053_v56 = vperm.slane %v1333_v35, %v3029_v30 }
 0x282   : > { %v2049_v10 = vperm.slane %v1331_v7, %v3012_v13  ;;  %v365_v7 = vld [vmem:[%s2466_s22 + $0x7a8] sm:$0xff] }
 0x283   : > { %1077 = vadd.xlane.f32.xlu2 %v1076_v36  ;;  %1074 = vadd.xlane.f32.xlu1 %v1073_v0  ;;  %v1112_v15 = vsel %vm376_vm0, %v365_v7, 0.0 }
 0x284   : > { %v2050_v43 = vsel %vm4134_vm2, %v2049_v10, %v2048_v17  ;;  %1071 = vadd.xlane.f32.xlu0 %v1070_v28 }
 0x285   : > { %v2052_v9 = vsel %vm4135_vm5, %v2051_v5, %v2050_v43  ;;  %v364_v5 = vld [vmem:[%s2466_s22 + $0x7a0] sm:$0xff] }
 0x286   : > { %v952_v21 = vpop.xlane.xlu2 %951  ;;  %v949_v18 = vpop.xlane.xlu1 %948  ;;  %v2054_v22 = vsel %vm4136_vm10, %v2053_v56, %v2052_v9  ;;  %v1115_v9 = vsel %vm376_vm0, %v366_v59, 0.0 }
 0x287   : > { %v1336_v50 = vmul.f32 0.015625, %v952_v21  ;;  %v1335_v20 = vmul.f32 0.015625, %v949_v18  ;;  %v946_v62 = vpop.xlane.xlu0 %945  ;;  %v1109_v21 = vsel %vm376_vm0, %v364_v5, 0.0 }
 0x288   : > { %v1334_v41 = vmul.f32 0.015625, %v946_v62  ;;  %v368_v62 = vld [vmem:[%s2466_s22 + $0x7c0] sm:$0xff] }
 0x289   : > { %v2057_v19 = vperm.slane %v1335_v20, %v3026_v14  ;;  %v2059_v48 = vperm.slane %v1336_v50, %v3058_v57  ;;  %v369_v20 = vld [vmem:[%s2466_s22 + $0x7c8] sm:$0xff]  ;;  %v1121_v51 = vsel %vm376_vm0, %v368_v62, 0.0 }
 0x28a   : > { %v2055_v46 = vperm.slane %v1334_v41, %v3033_v33 }
 0x28b   : > { %1098 = vadd.xlane.f32.xlu2 %v1097_v23  ;;  %1083 = vadd.xlane.f32.xlu1 %v1082_v53 }
 0x28c   : > { %v2056_v29 = vsel %vm1710_vm13, %v2055_v46, %v2054_v22  ;;  %1080 = vadd.xlane.f32.xlu0 %v1079_v8 }
 0x28d   : > { %v2058_v26 = vsel %vm1714_vm14, %v2057_v19, %v2056_v29  ;;  %v367_v19 = vld [vmem:[%s2466_s22 + $0x7b8] sm:$0xff] }
 0x28e   : > { %v2060_v47 = vsel %vm1718_vm15, %v2059_v48, %v2058_v26  ;;  %v961_v24 = vpop.xlane.xlu2 %960  ;;  %v958_v54 = vpop.xlane.xlu1 %957  ;;  %v1124_v26 = vsel %vm376_vm0, %v369_v20, 0.0 }
 0x28f   : > { %v1339_v60 = vmul.f32 0.015625, %v961_v24  ;;  %v1338_v37 = vmul.f32 0.015625, %v958_v54  ;;  %v955_v32 = vpop.xlane.xlu0 %954  ;;  %v3751_v38 = vsel %vm2193_vm9, %v2060_v47, %v3621_v49  ;;  %vm4137_vm9 = vcmask 195712  }
 0x290   : > { %v1337_v31 = vmul.f32 0.015625, %v955_v32  ;;  %v1118_v47 = vsel %vm376_vm0, %v367_v19, 0.0  ;;  %v371_v32 = vld [vmem:[%s2466_s22 + $0x7d8] sm:$0xff] }
 0x291   : > { %v2064_v3 = vperm.slane %v1339_v60, %v2959_v44  ;;  %v2062_v17 = vperm.slane %v1338_v37, %v2951_v2  ;;  %v356_v37 = vld [vmem:[%s2466_s22 + $0x760] sm:$0xff]  ;;  %v1130_v59 = vsel %vm376_vm0, %v371_v32, 0.0 }
 0x292   : > { %v2061_v35 = vperm.slane %v1337_v31, %v2948_v4 }
 0x293   : > { %1107 = vadd.xlane.f32.xlu2 %v1106_v40  ;;  %1104 = vadd.xlane.f32.xlu1 %v1103_v16 }
 0x294   : > { %v2063_v58 = vsel %vm1662_vm1, %v2062_v17, %v2061_v35  ;;  %1101 = vadd.xlane.f32.xlu0 %v1100_v63 }
 0x295   : > { %v2065_v49 = vsel %vm4137_vm9, %v2064_v3, %v2063_v58  ;;  %v370_v3 = vld [vmem:[%s2466_s22 + $0x7d0] sm:$0xff]  ;;  %vm2195_vm9 = vcmask 1046534  }
 0x296   : > { %v970_v36 = vpop.xlane.xlu2 %969  ;;  %v967_v0 = vpop.xlane.xlu1 %966 }
 0x297   : > { %v1342_v28 = vmul.f32 0.015625, %v970_v36  ;;  %v1341_v56 = vmul.f32 0.015625, %v967_v0  ;;  %v964_v10 = vpop.xlane.xlu0 %963  ;;  %v1127_v36 = vsel %vm376_vm0, %v370_v3, 0.0 }
 0x298   : > { %v1340_v43 = vmul.f32 0.015625, %v964_v10  ;;  %v357_v10 = vld [vmem:[%s2466_s22 + $0x768] sm:$0xff] }
 0x299   : > { %v2068_v42 = vperm.slane %v1341_v56, %v2971_v39  ;;  %v2070_v18 = vperm.slane %v1342_v28, %v2979_v11  ;;  %v1088_v20 = vsel %vm376_vm0, %v357_v10, 0.0 }
 0x29a   : > { %v2066_v22 = vperm.slane %v1340_v43, %v2964_v45  ;;  %v373_v43 = vld [vmem:[%s2466_s22 + $0x7e8] sm:$0xff] }
 0x29b   : > { %1116 = vadd.xlane.f32.xlu2 %v1115_v9  ;;  %1113 = vadd.xlane.f32.xlu1 %v1112_v15  ;;  %v1136_v62 = vsel %vm376_vm0, %v373_v43, 0.0 }
 0x29c   : > { %v2067_v6 = vsel %vm1670_vm3, %v2066_v22, %v2065_v49  ;;  %1110 = vadd.xlane.f32.xlu0 %v1109_v21  ;;  %v1085_v49 = vsel %vm376_vm0, %v356_v37, 0.0  ;;  %v372_v21 = vld [vmem:[%s2466_s22 + $0x7e0] sm:$0xff] }
 0x29d   : > { %v2069_v50 = vsel %vm4130_vm11, %v2068_v42, %v2067_v6  ;;  %vm4138_vm11 = vcmask 195712  }
 0x29e   : > { %v979_v41 = vpop.xlane.xlu2 %978  ;;  %v976_v23 = vpop.xlane.xlu1 %975  ;;  %v2071_v53 = vsel %vm4131_vm12, %v2070_v18, %v2069_v50  ;;  %vm4139_vm12 = vcmask 326912  }
 0x29f   : > { %v1345_v8 = vmul.f32 0.015625, %v979_v41  ;;  %v1344_v48 = vmul.f32 0.015625, %v976_v23  ;;  %v973_v46 = vpop.xlane.xlu0 %972  ;;  %v1133_v23 = vsel %vm376_vm0, %v372_v21, 0.0 }
 0x2a0   : > { %v1343_v29 = vmul.f32 0.015625, %v973_v46  ;;  %v374_v46 = vld [vmem:[%s2466_s22 + $0x7f0] sm:$0xff] }
 0x2a1   : > { %v2074_v12 = vperm.slane %v1344_v48, %v2992_v27  ;;  %v2076_v24 = vperm.slane %v1345_v8, %v2999_v25  ;;  %v1139_v37 = vsel %vm376_vm0, %v374_v46, 0.0 }
 0x2a2   : > { %v2072_v54 = vperm.slane %v1343_v29, %v2983_v52  ;;  %v359_v29 = vld [vmem:[%s2466_s22 + $0x778] sm:$0xff] }
 0x2a3   : > { %1125 = vadd.xlane.f32.xlu2 %v1124_v26  ;;  %1122 = vadd.xlane.f32.xlu1 %v1121_v51  ;;  %v1094_v32 = vsel %vm376_vm0, %v359_v29, 0.0 }
 0x2a4   : > { %v2073_v55 = vsel %vm1682_vm6, %v2072_v54, %v2071_v53  ;;  %1119 = vadd.xlane.f32.xlu0 %v1118_v47  ;;  %v358_v47 = vld [vmem:[%s2466_s22 + $0x770] sm:$0xff] }
 0x2a5   : > { %v2075_v60 = vsel %vm1686_vm7, %v2074_v12, %v2073_v55 }
 0x2a6   : > { %v988_v31 = vpop.xlane.xlu2 %987  ;;  %v985_v40 = vpop.xlane.xlu1 %984  ;;  %v2077_v16 = vsel %vm4132_vm8, %v2076_v24, %v2075_v60 }
 0x2a7   : > { %v1348_v17 = vmul.f32 0.015625, %v988_v31  ;;  %v1347_v63 = vmul.f32 0.015625, %v985_v40  ;;  %v982_v35 = vpop.xlane.xlu0 %981 }
 0x2a8   : > { %v1346_v58 = vmul.f32 0.015625, %v982_v35 }
 0x2a9   : > { %v2080_v7 = vperm.slane %v1347_v63, %v3012_v13  ;;  %v2082_v0 = vperm.slane %v1348_v17, %v3018_v34 }
 0x2aa   : > { %v2078_v5 = vperm.slane %v1346_v58, %v3004_v61 }
 0x2ab   : > { %1086 = vadd.xlane.f32.xlu2 %v1085_v49  ;;  %1131 = vadd.xlane.f32.xlu1 %v1130_v59  ;;  %v375_v59 = vld [vmem:[%s2466_s22 + $0x7f8] sm:$0xff] }
 0x2ac   : > { %v2079_v28 = vsel %vm4133_vm4, %v2078_v5, %v2077_v16  ;;  %1128 = vadd.xlane.f32.xlu0 %v1127_v36  ;;  %v1091_v16 = vsel %vm376_vm0, %v358_v47, 0.0 }
 0x2ad   : > { %v2081_v56 = vsel %vm4134_vm2, %v2080_v7, %v2079_v28 }
 0x2ae   : > { %v997_v9 = vpop.xlane.xlu2 %996  ;;  %v994_v15 = vpop.xlane.xlu1 %993  ;;  %v2083_v42 = vsel %vm4135_vm5, %v2082_v0, %v2081_v56  ;;  %v1142_v56 = vsel %vm376_vm0, %v375_v59, 0.0  ;;  %vm4140_vm0 = vcmask 392512  }
 0x2af   : > { %v1351_v18 = vmul.f32 0.015625, %v997_v9  ;;  %v1350_v22 = vmul.f32 0.015625, %v994_v15  ;;  %v991_v6 = vpop.xlane.xlu0 %990 }
 0x2b0   : > { %v1349_v50 = vmul.f32 0.015625, %v991_v6 }
 0x2b1   : > { %v2086_v41 = vperm.slane %v1350_v22, %v3033_v33  ;;  %v2088_v53 = vperm.slane %v1351_v18, %v3026_v14 }
 0x2b2   : > { %v2084_v19 = vperm.slane %v1349_v50, %v3029_v30 }
 0x2b3   : > { %1089 = vadd.xlane.f32.xlu1 %v1088_v20  ;;  %1137 = vadd.xlane.f32.xlu2 %v1136_v62 }
 0x2b4   : > { %v2085_v8 = vsel %vm4136_vm10, %v2084_v19, %v2083_v42  ;;  %1134 = vadd.xlane.f32.xlu0 %v1133_v23 }
 0x2b5   : > { %v2087_v48 = vsel %vm1710_vm13, %v2086_v41, %v2085_v8 }
 0x2b6   : > { %v1006_v26 = vpop.xlane.xlu2 %1005  ;;  %v1003_v51 = vpop.xlane.xlu1 %1002  ;;  %v2089_v12 = vsel %vm1714_vm14, %v2088_v53, %v2087_v48 }
 0x2b7   : > { %v1354_v24 = vmul.f32 0.015625, %v1006_v26  ;;  %v1353_v54 = vmul.f32 0.015625, %v1003_v51  ;;  %v1000_v55 = vpop.xlane.xlu0 %999 }
 0x2b8   : > { %v1352_v60 = vmul.f32 0.015625, %v1000_v55 }
 0x2b9   : > { %v2093_v31 = vperm.slane %v1354_v24, %v2951_v2  ;;  %v2092_v40 = vperm.slane %v1353_v54, %v2948_v4 }
 0x2ba   : > { %v2090_v3 = vperm.slane %v1352_v60, %v3058_v57 }
 0x2bb   : > { %v2094_v17 = vsel %vm1662_vm1, %v2093_v31, %v2092_v40  ;;  %1140 = vadd.xlane.f32.xlu1 %v1139_v37  ;;  %1095 = vadd.xlane.f32.xlu2 %v1094_v32 }
 0x2bc   : > { %v2091_v63 = vsel %vm1718_vm15, %v2090_v3, %v2089_v12  ;;  %1092 = vadd.xlane.f32.xlu0 %v1091_v16 }
 0x2bd   : > { %v3822_v35 = vsel %vm2195_vm9, %v2091_v63, %v3686_v1 }
 0x2be   : > { %v1015_v58 = vpop.xlane.xlu2 %1014  ;;  %v1012_v49 = vpop.xlane.xlu1 %1011 }
 0x2bf   : > { %v1357_v7 = vmul.f32 0.015625, %v1015_v58  ;;  %v1356_v36 = vmul.f32 0.015625, %v1012_v49  ;;  %v1009_v0 = vpop.xlane.xlu0 %1008 }
 0x2c0   : > { %v1355_v5 = vmul.f32 0.015625, %v1009_v0 }
 0x2c1   : > { %v2097_v28 = vperm.slane %v1356_v36, %v2964_v45  ;;  %v2099_v10 = vperm.slane %v1357_v7, %v2971_v39 }
 0x2c2   : > { %v2095_v43 = vperm.slane %v1355_v5, %v2959_v44 }
 0x2c4   : > { %v2096_v9 = vsel %vm4138_vm11, %v2095_v43, %v2094_v17  ;;  %1143 = vadd.xlane.f32.xlu0 %v1142_v56 }
 0x2c5   : > { %v2098_v1 = vsel %vm1670_vm3, %v2097_v28, %v2096_v9 }
 0x2c6   : > { %v1024_v15 = vpop.xlane.xlu2 %1023  ;;  %v1021_v42 = vpop.xlane.xlu1 %1020  ;;  %v2100_v21 = vsel %vm4139_vm12, %v2099_v10, %v2098_v1 }
 0x2c7   : > { %v1360_v18 = vmul.f32 0.015625, %v1024_v15  ;;  %v1359_v22 = vmul.f32 0.015625, %v1021_v42  ;;  %v1018_v6 = vpop.xlane.xlu0 %1017 }
 0x2c8   : > { %v1358_v50 = vmul.f32 0.015625, %v1018_v6 }
 0x2c9   : > { %v2103_v20 = vperm.slane %v1359_v22, %v2983_v52  ;;  %v2105_v62 = vperm.slane %v1360_v18, %v2992_v27 }
 0x2ca   : > { %v2101_v41 = vperm.slane %v1358_v50, %v2979_v11 }
 0x2cc   : > { %v2102_v23 = vsel %vm4140_vm0, %v2101_v41, %v2100_v21 }
 0x2cd   : > { %v2104_v53 = vsel %vm1682_vm6, %v2103_v20, %v2102_v23 }
 0x2ce   : > { %v1033_v19 = vpop.xlane.xlu2 %1032  ;;  %v1030_v8 = vpop.xlane.xlu1 %1029  ;;  %v2106_v48 = vsel %vm1686_vm7, %v2105_v62, %v2104_v53 }
 0x2cf   : > { %v1363_v46 = vmul.f32 0.015625, %v1033_v19  ;;  %v1362_v29 = vmul.f32 0.015625, %v1030_v8  ;;  %v1027_v26 = vpop.xlane.xlu0 %1026 }
 0x2d0   : > { %v1361_v51 = vmul.f32 0.015625, %v1027_v26 }
 0x2d1   : > { %v2109_v12 = vperm.slane %v1362_v29, %v3004_v61  ;;  %v2111_v47 = vperm.slane %v1363_v46, %v3012_v13 }
 0x2d2   : > { %v2107_v24 = vperm.slane %v1361_v51, %v2999_v25 }
 0x2d4   : > { %v2108_v54 = vsel %vm4132_vm8, %v2107_v24, %v2106_v48 }
 0x2d5   : > { %v2110_v55 = vsel %vm4133_vm4, %v2109_v12, %v2108_v54 }
 0x2d6   : > { %v1042_v60 = vpop.xlane.xlu2 %1041  ;;  %v1039_v37 = vpop.xlane.xlu1 %1038  ;;  %v2112_v32 = vsel %vm4134_vm2, %v2111_v47, %v2110_v55 }
 0x2d7   : > { %v1366_v31 = vmul.f32 0.015625, %v1042_v60  ;;  %v1365_v40 = vmul.f32 0.015625, %v1039_v37  ;;  %v1036_v16 = vpop.xlane.xlu0 %1035 }
 0x2d8   : > { %v1364_v3 = vmul.f32 0.015625, %v1036_v16 }
 0x2d9   : > { %v2115_v17 = vperm.slane %v1365_v40, %v3029_v30  ;;  %v2117_v63 = vperm.slane %v1366_v31, %v3033_v33 }
 0x2da   : > { %v2113_v58 = vperm.slane %v1364_v3, %v3018_v34 }
 0x2dc   : > { %v2114_v49 = vsel %vm4135_vm5, %v2113_v58, %v2112_v32 }
 0x2dd   : > { %v2116_v59 = vsel %vm4136_vm10, %v2115_v17, %v2114_v49  ;;  %vm2197_vm10 = vcmask 1047559  }
 0x2de   : > { %v1051_v7 = vpop.xlane.xlu2 %1050  ;;  %v1048_v36 = vpop.xlane.xlu1 %1047  ;;  %v2118_v0 = vsel %vm1710_vm13, %v2117_v63, %v2116_v59 }
 0x2df   : > { %v1368_v5 = vmul.f32 0.015625, %v1048_v36  ;;  %v1045_v28 = vpop.xlane.xlu0 %1044  ;;  %v1369_v12 = vmul.f32 0.015625, %v1051_v7 }
 0x2e0   : > { %v1367_v56 = vmul.f32 0.015625, %v1045_v28 }
 0x2e1   : > { %v2121_v10 = vperm.slane %v1368_v5, %v3058_v57  ;;  %v2123_v24 = vperm.slane %v1369_v12, %v2948_v4 }
 0x2e2   : > { %v2119_v43 = vperm.slane %v1367_v56, %v3026_v14 }
 0x2e4   : > { %v2120_v9 = vsel %vm1714_vm14, %v2119_v43, %v2118_v0 }
 0x2e5   : > { %v2122_v1 = vsel %vm1718_vm15, %v2121_v10, %v2120_v9 }
 0x2e6   : > { %v1060_v15 = vpop.xlane.xlu2 %1059  ;;  %v1057_v42 = vpop.xlane.xlu1 %1056  ;;  %v3856_v21 = vsel %vm2195_vm9, %v2122_v1, %v3751_v38  ;;  %vm4141_vm9 = vmmov %vm4138_vm11 }
 0x2e7   : > { %v1054_v18 = vpop.xlane.xlu0 %1053  ;;  %v1371_v47 = vmul.f32 0.015625, %v1057_v42  ;;  %v1372_v37 = vmul.f32 0.015625, %v1060_v15  ;;  %vm4142_vm11 = vmmov %vm4139_vm12 }
 0x2e8   : > { %v1370_v38 = vmul.f32 0.015625, %v1054_v18  ;;  %vm4143_vm12 = vmmov %vm4141_vm9 }
 0x2e9   : > { %v2126_v40 = vperm.slane %v1371_v47, %v2959_v44  ;;  %v2128_v59 = vperm.slane %v1372_v37, %v2964_v45 }
 0x2ea   : > { %v2124_v54 = vperm.slane %v1370_v38, %v2951_v2 }
 0x2ec   : > { %v2125_v17 = vsel %vm1662_vm1, %v2124_v54, %v2123_v24 }
 0x2ed   : > { %v2127_v36 = vsel %vm4141_vm9, %v2126_v40, %v2125_v17  ;;  %vm4151_vm9 = vcmask 851712  }
 0x2ee   : > { %v1069_v22 = vpop.xlane.xlu2 %1068  ;;  %v1066_v6 = vpop.xlane.xlu1 %1065 }
 0x2ef   : > { %v1063_v50 = vpop.xlane.xlu0 %1062  ;;  %v1374_v7 = vmul.f32 0.015625, %v1066_v6  ;;  %v1375_v10 = vmul.f32 0.015625, %v1069_v22 }
 0x2f0   : > { %v1373_v16 = vmul.f32 0.015625, %v1063_v50 }
 0x2f1   : > { %v2132_v9 = vperm.slane %v1374_v7, %v2979_v11  ;;  %v2134_v22 = vperm.slane %v1375_v10, %v2983_v52 }
 0x2f2   : > { %v2130_v0 = vperm.slane %v1373_v16, %v2971_v39 }
 0x2f6   : > { %v1078_v20 = vpop.xlane.xlu2 %1077  ;;  %v1075_v62 = vpop.xlane.xlu1 %1074 }
 0x2f7   : > { %v1072_v41 = vpop.xlane.xlu0 %1071 }
 0x2f8   : > { %v1376_v1 = vmul.f32 0.015625, %v1072_v41 }
 0x2fe   : > { %v1099_v23 = vpop.xlane.xlu2 %1098  ;;  %v3858_v53 = vpop.xlane.xlu1 %1083 }
 0x2ff   : > { %v1081_v19 = vpop.xlane.xlu0 %1080  ;;  %v1385_v55 = vmul.f32 0.015625, %v1099_v23 }
 0x301   : > { %v2154_v58 = vperm.slane %v1385_v55, %v2948_v4  ;;  %v2129_v4 = vsel %vm1670_vm3, %v2128_v59, %v2127_v36 }
 0x302   : > { %v2131_v42 = vsel %vm4142_vm11, %v2130_v0, %v2129_v4 }
 0x306   : > { %v1108_v8 = vpop.xlane.xlu2 %1107  ;;  %v1105_v48 = vpop.xlane.xlu1 %1104 }
 0x307   : > { %v1102_v46 = vpop.xlane.xlu0 %1101  ;;  %v1387_v63 = vmul.f32 0.015625, %v1105_v48  ;;  %v1388_v5 = vmul.f32 0.015625, %v1108_v8  ;;  %v1377_v8 = vmul.f32 0.015625, %v1075_v62  ;;  %v1379_v62 = vmul.f32 0.015625, %v1081_v19 }
 0x308   : > { %v1386_v60 = vmul.f32 0.015625, %v1102_v46  ;;  %v2136_v46 = vperm.slane %v1376_v1, %v2992_v27 }
 0x309   : > { %v2157_v28 = vperm.slane %v1387_v63, %v2959_v44  ;;  %v2159_v18 = vperm.slane %v1388_v5, %v2964_v45  ;;  %v2138_v47 = vperm.slane %v1377_v8, %v2999_v25  ;;  %v2142_v19 = vperm.slane %v1379_v62, %v3012_v13 }
 0x30a   : > { %v2155_v49 = vperm.slane %v1386_v60, %v2951_v2 }
 0x30c   : > { %v2156_v43 = vsel %vm1662_vm1, %v2155_v49, %v2154_v58  ;;  %vm4144_vm1 = vmmov %vm4140_vm0 }
 0x30d   : > { %v2158_v23 = vsel %vm4143_vm12, %v2157_v28, %v2156_v43  ;;  %v2133_v48 = vsel %vm4144_vm1, %v2132_v9, %v2131_v42  ;;  %vm4145_vm0 = vmmov %vm4142_vm11 }
 0x30e   : > { %v1117_v29 = vpop.xlane.xlu2 %1116  ;;  %v1114_v26 = vpop.xlane.xlu1 %1113  ;;  %v2160_v12 = vsel %vm1670_vm3, %v2159_v18, %v2158_v23  ;;  %vm4146_vm8 = vmmov %vm4144_vm1  ;;  %vm4147_vm3 = vcmask 589312  }
 0x30f   : > { %v1111_v51 = vpop.xlane.xlu0 %1110  ;;  %v1390_v6 = vmul.f32 0.015625, %v1114_v26  ;;  %v1391_v41 = vmul.f32 0.015625, %v1117_v29  ;;  %v1378_v26 = vmul.f32 0.015625, %v1078_v20  ;;  %vm4148_vm5 = vmmov %vm4147_vm3 }
 0x310   : > { %v1389_v56 = vmul.f32 0.015625, %v1111_v51  ;;  %vm4152_vm11 = vmmov %vm4134_vm2 }
 0x311   : > { %v2163_v51 = vperm.slane %v1390_v6, %v2979_v11  ;;  %v2165_v54 = vperm.slane %v1391_v41, %v2983_v52  ;;  %v2140_v16 = vperm.slane %v1378_v26, %v3004_v61  ;;  %vm4154_vm1 = vmmov %vm4151_vm9 }
 0x312   : > { %v2161_v44 = vperm.slane %v1389_v56, %v2971_v39  ;;  %v2135_v39 = vsel %vm1682_vm6, %v2134_v22, %v2133_v48 }
 0x313   : > { %v2137_v24 = vsel %vm1686_vm7, %v2136_v46, %v2135_v39 }
 0x314   : > { %v2162_v45 = vsel %vm4145_vm0, %v2161_v44, %v2160_v12  ;;  %v2139_v20 = vsel %vm4147_vm3, %v2138_v47, %v2137_v24 }
 0x315   : > { %v2164_v11 = vsel %vm4146_vm8, %v2163_v51, %v2162_v45  ;;  %v2141_v7 = vsel %vm4133_vm4, %v2140_v16, %v2139_v20 }
 0x316   : > { %v1126_v32 = vpop.xlane.xlu2 %1125  ;;  %v1123_v31 = vpop.xlane.xlu1 %1122 }
 0x317   : > { %v1120_v3 = vpop.xlane.xlu0 %1119  ;;  %v1393_v55 = vmul.f32 0.015625, %v1123_v31  ;;  %v1394_v17 = vmul.f32 0.015625, %v1126_v32  ;;  %v2166_v31 = vsel %vm1682_vm6, %v2165_v54, %v2164_v11  ;;  %vm4149_vm6 = vcmask 786112  }
 0x318   : > { %v1392_v38 = vmul.f32 0.015625, %v1120_v3  ;;  %v1380_v3 = vmul.f32 0.015625, %v3858_v53  ;;  %v2143_v53 = vsel %vm4134_vm2, %v2142_v19, %v2141_v7  ;;  %vm4153_vm12 = vmmov %vm4149_vm6 }
 0x319   : > { %v2169_v52 = vperm.slane %v1393_v55, %v2999_v25  ;;  %v2171_v36 = vperm.slane %v1394_v17, %v3004_v61 }
 0x31a   : > { %v2167_v37 = vperm.slane %v1392_v38, %v2992_v27  ;;  %v2144_v59 = vperm.slane %v1380_v3, %v3018_v34 }
 0x31c   : > { %v2168_v58 = vsel %vm1686_vm7, %v2167_v37, %v2166_v31  ;;  %v2145_v1 = vsel %vm4149_vm6, %v2144_v59, %v2143_v53  ;;  %vm4150_vm7 = vmmov %vm4133_vm4 }
 0x31d   : > { %v2170_v32 = vsel %vm4148_vm5, %v2169_v52, %v2168_v58 }
 0x31e   : > { %v1087_v2 = vpop.xlane.xlu2 %1086  ;;  %v1132_v15 = vpop.xlane.xlu1 %1131 }
 0x31f   : > { %v1129_v50 = vpop.xlane.xlu0 %1128  ;;  %v1381_v63 = vmul.f32 0.015625, %v1087_v2  ;;  %v1396_v0 = vmul.f32 0.015625, %v1132_v15  ;;  %v2172_v2 = vsel %vm4150_vm7, %v2171_v36, %v2170_v32 }
 0x320   : > { %v1395_v49 = vmul.f32 0.015625, %v1129_v50 }
 0x321   : > { %v2146_v25 = vperm.slane %v1381_v63, %v3029_v30 }
 0x322   : > { %v2173_v28 = vperm.slane %v1395_v49, %v3012_v13  ;;  %v2175_v13 = vperm.slane %v1396_v0, %v3018_v34 }
 0x323   : > { %v2147_v15 = vsel %vm4151_vm9, %v2146_v25, %v2145_v1 }
 0x324   : > { %v2174_v50 = vsel %vm4152_vm11, %v2173_v28, %v2172_v2 }
 0x325   : > { %v2176_v46 = vsel %vm4153_vm12, %v2175_v13, %v2174_v50 }
 0x326   : > { %v1090_v60 = vpop.xlane.xlu1 %1089  ;;  %v1138_v29 = vpop.xlane.xlu2 %1137 }
 0x327   : > { %v1135_v40 = vpop.xlane.xlu0 %1134  ;;  %v1382_v27 = vmul.f32 0.015625, %v1090_v60  ;;  %v1398_v18 = vmul.f32 0.015625, %v1138_v29 }
 0x328   : > { %v1397_v10 = vmul.f32 0.015625, %v1135_v40 }
 0x329   : > { %v2148_v56 = vperm.slane %v1382_v27, %v3033_v33  ;;  %v2179_v41 = vperm.slane %v1398_v18, %v3033_v33 }
 0x32a   : > { %v2177_v44 = vperm.slane %v1397_v10, %v3029_v30 }
 0x32b   : > { %v2149_v23 = vsel %vm1710_vm13, %v2148_v56, %v2147_v15 }
 0x32c   : > { %v2178_v51 = vsel %vm4154_vm1, %v2177_v44, %v2176_v46 }
 0x32d   : > { %v2180_v33 = vsel %vm1710_vm13, %v2179_v41, %v2178_v51 }
 0x32e   : > { %v1096_v5 = vpop.xlane.xlu2 %1095  ;;  %v1141_v4 = vpop.xlane.xlu1 %1140 }
 0x32f   : > { %v1093_v43 = vpop.xlane.xlu0 %1092  ;;  %v1384_v9 = vmul.f32 0.015625, %v1096_v5  ;;  %v1399_v22 = vmul.f32 0.015625, %v1141_v4 }
 0x330   : > { %v1383_v61 = vmul.f32 0.015625, %v1093_v43 }
 0x331   : > { %v2152_v42 = vperm.slane %v1384_v9, %v3058_v57  ;;  %v2181_v30 = vperm.slane %v1399_v22, %v3026_v14 }
 0x332   : > { %v2150_v6 = vperm.slane %v1383_v61, %v3026_v14 }
 0x333   : > { %v2182_v45 = vsel %vm1714_vm14, %v2181_v30, %v2180_v33 }
 0x334   : > { %v2151_v8 = vsel %vm1714_vm14, %v2150_v6, %v2149_v23 }
 0x335   : > { %v2153_v48 = vsel %vm1718_vm15, %v2152_v42, %v2151_v8 }
 0x336   : > { %v2198_v34 = vsel %vm2197_vm10, %v2153_v48, %v3822_v35 }
 0x337   : > { %v1144_v12 = vpop.xlane.xlu0 %1143  ;;  %2208 = vst [vmem:[%s112_s29] sm:$0xff] %v2198_v34 }
 0x338   : > { %v1400_v38 = vmul.f32 0.015625, %v1144_v12 }
 0x33a   : > { %v2183_v35 = vperm.slane %v1400_v38, %v3058_v57 }
 0x33c   : > { %v2184_v26 = vsel %vm1718_vm15, %v2183_v35, %v2182_v45 }
 0x33d   : > { %v2205_v14 = vsel %vm2197_vm10, %v2184_v26, %v3856_v21 }
 0x33e   : > { %2209 = vst [vmem:[%s112_s29 + $0x8] sm:$0xff] %v2205_v14 }
 0x33f   : > { %2367 = shalt.err (!%p2364_p3)
}
 0x340   : > { %2301 = dma.vmem_to_hbm [thread:$0]  (%p2452_p5), %s2225_s30, 256, %s2227_s2, %s2211_s3  }
 0x341 PF: > { %p2307_p4 = scmp.ge.s32.totalorder %s2402_s9, 2  ;;  %s2238_s19 = sand.u32 1, %s2390_s6  }
 0x342   : > { %s2239_s20 = scalar_lea.sflag [#allocation3], %s2238_s19 }
 0x343   : > { %p2304_p7 = pnand %p2307_p4, %p2456_p6 }
 0x345   : > { %p2305_p8 = pneg %p2304_p7 }
 0x347   : > { %2385 = dma.done.wait (%p2305_p8), %s2239_s20, 256  }
 0x348   : > { %2387 = vsyncadd (%p2305_p8), %s2239_s20, 4294967040  ;;  %p11_p9 = scmp.ge.s32.totalorder %s2439_s12, 4   ;;  %s4155_s6 = smov %s2394_s7 }
 0x349   : > { %s4156_s7 = smov %s2398_s8  ;;  %s4157_s8 = smov %s2450_s15 }
 0x34a   : > { %s4158_s9 = smov %s2439_s12  ;;  %13 = sbr.rel (!%p11_p9) target bundleno = 3 (0x3), region = 59 }
 0x34f   :  { %2245 = vsyncpa [#allocation3], 1 }
 0x350   :  { %2247 = vsyncpa [#allocation3 + $0x1], 1 }

</bundles_post_ra>
